<compile_context>
chip_gen: v7x
topology: tpu7x:2x2x1
jax: 0.10.0
libtpu: 0.0.40
codegen_flags: <defaults>
</compile_context>

<pallas_src>
import functools
import math

import jax
import jax.numpy as jnp
import numpy as np
from jax.experimental import pallas as pl
from jax.experimental.pallas import tpu as pltpu

EPS = 1e-5  # LayerNorm eps (matches the book's custom LayerNorm)


def _layernorm(x, scale, shift):
    mean = jnp.mean(x, axis=-1, keepdims=True)
    var = jnp.mean((x - mean) ** 2, axis=-1, keepdims=True)  # unbiased=False
    return (x - mean) * jax.lax.rsqrt(var + EPS) * scale + shift


def _gelu_tanh(x):
    # GELU (tanh approximation), as used in the GPT-2 FeedForward block.
    return 0.5 * x * (1.0 + jnp.tanh(
        jnp.sqrt(2.0 / jnp.pi) * (x + 0.044715 * x * x * x)))


# ---------------------------------------------------------------------------
# Kernel 1: LN1 + fused QKV projection, computed once per (batch, token tile).
# Writes bf16, head-major (H, tile, hd) Q/K/V; folds 1/sqrt(hd) into Q.
# ---------------------------------------------------------------------------
def qkv_proj_kernel(x_ref, ln1_s_ref, ln1_b_ref, wqkv_ref, bqkv_ref,
                    q_ref, k_ref, v_ref, *, heads, scale):
    x = x_ref[...]                                   # (TS, D) f32
    ts, d = x.shape
    hd = d // heads

    xn = _layernorm(x, ln1_s_ref[...], ln1_b_ref[...]).astype(jnp.bfloat16)
    qkv = jnp.dot(xn, wqkv_ref[...],
                  preferred_element_type=jnp.float32) + bqkv_ref[...]  # (TS, 3D)

    q = qkv[:, :d] * scale          # fold 1/sqrt(hd) into q once, here
    k = qkv[:, d:2 * d]
    v = qkv[:, 2 * d:]

    # Head-major layout so kernel 2's per-KV-step einsums are plain batched
    # matmuls with a leading head dim (no relayout in the attention hot loop).
    q_ref[...] = q.reshape(ts, heads, hd).transpose(1, 0, 2).astype(q_ref.dtype)
    k_ref[...] = k.reshape(ts, heads, hd).transpose(1, 0, 2).astype(k_ref.dtype)
    v_ref[...] = v.reshape(ts, heads, hd).transpose(1, 0, 2).astype(v_ref.dtype)


# ---------------------------------------------------------------------------
# Kernel 2: flash-style causal attention (online softmax over KV tiles) fused
# with output projection, residual, LN2, FFN, residual.
# Grid: (B, T//TQ, T//TQ), KV axis innermost and "arbitrary".
# ---------------------------------------------------------------------------
def attn_ffn_kernel(x_ref, q_ref, k_ref, v_ref,
                    wo_ref, bo_ref, ln2_s_ref, ln2_b_ref,
                    w1_ref, b1_ref, w2_ref, b2_ref,
                    o_ref,
                    m_sc, l_sc, acc_sc, *, tq, tk):
    qi = pl.program_id(1)
    kv = pl.program_id(2)

    @pl.when(kv == 0)
    def _():
        m_sc[...] = jnp.full_like(m_sc, -jnp.inf)
        l_sc[...] = jnp.zeros_like(l_sc)
        acc_sc[...] = jnp.zeros_like(acc_sc)

    # Causal skip: only lower-triangular KV tiles contribute (TQ == TK tiles).
    @pl.when(kv <= qi)
    def _():
        q3 = q_ref[...]          # (H, TQ, hd) bf16, already scaled by 1/sqrt(hd)
        k3 = k_ref[...]          # (H, TK, hd) bf16
        v3 = v_ref[...]          # (H, TK, hd) bf16

        sc = jnp.einsum("hqd,hkd->hqk", q3, k3,
                        preferred_element_type=jnp.float32)   # (H, TQ, TK) f32

        # 2-D causal mask broadcast over heads (only the diagonal tile actually
        # needs it, but the compare is cheap and 2-D keeps it small).
        q_off = qi * tq
        kv_off = kv * tk
        row = jax.lax.broadcasted_iota(jnp.int32, (tq, tk), 0) + q_off
        col = jax.lax.broadcasted_iota(jnp.int32, (tq, tk), 1) + kv_off
        sc = jnp.where((col <= row)[None, :, :], sc, -1e30)

        # Online softmax update (f32 statistics).
        m_prev = m_sc[...]
        m_new = jnp.maximum(m_prev, jnp.max(sc, axis=-1, keepdims=True))
        alpha = jnp.exp(m_prev - m_new)
        p = jnp.exp(sc - m_new)
        l_sc[...] = alpha * l_sc[...] + jnp.sum(p, axis=-1, keepdims=True)
        acc_sc[...] = alpha * acc_sc[...] + jnp.einsum(
            "hqk,hkd->hqd", p.astype(jnp.bfloat16), v3,
            preferred_element_type=jnp.float32)
        m_sc[...] = m_new

    # Finalize at the last causally-needed KV tile; later (fully masked) grid
    # steps for this query tile do nothing.
    @pl.when(kv == qi)
    def _():
        h, tq_, hd = acc_sc.shape
        d = h * hd
        ctx = acc_sc[...] * pl.reciprocal(l_sc[...], approx=True)   # (H,TQ,hd)
        ctx = ctx.transpose(1, 0, 2).reshape(tq_, d).astype(jnp.bfloat16)

        attn_out = jnp.dot(ctx, wo_ref[...],
                           preferred_element_type=jnp.float32) + bo_ref[...]

        # dropout -> identity; first residual
        x1 = x_ref[...] + attn_out

        # LayerNorm 2 + FeedForward (bf16 matmuls, f32 accumulate)
        xn2 = _layernorm(x1, ln2_s_ref[...], ln2_b_ref[...]).astype(jnp.bfloat16)
        h1 = jnp.dot(xn2, w1_ref[...],
                     preferred_element_type=jnp.float32) + b1_ref[...]
        h1 = _gelu_tanh(h1).astype(jnp.bfloat16)
        ff = jnp.dot(h1, w2_ref[...],
                     preferred_element_type=jnp.float32) + b2_ref[...]

        # dropout -> identity; second residual
        o_ref[...] = (x1 + ff).astype(o_ref.dtype)


# ---------------------------------------------------------------------------
# Wrapper
# ---------------------------------------------------------------------------
def _param_spec(shape, single_buffer):
    ndim = len(shape)
    index_map = lambda *_: (0,) * ndim          # constant -> never re-DMA'd
    if single_buffer:
        # Resident weights: no need for a 2-deep pipeline buffer.
        return pl.BlockSpec(shape, index_map, pipeline_mode=pl.Buffered(1))
    return pl.BlockSpec(shape, index_map)


def _vmem_budget():
    try:
        cap = int(pltpu.get_tpu_info().vmem_capacity_bytes)
    except Exception:
        cap = 128 * 1024 * 1024
    # ~25% headroom for compiler-internal scratch: ~48 MiB on 64 MiB (v7x-class)
    # parts, capped at 100 MiB on 128 MiB (v5e/v6e) parts.
    limit = max(32 * 1024 * 1024, min(cap * 3 // 4, 100 * 1024 * 1024))
    return limit, cap


def _transformer_block_impl(x, params, *, heads, tq, single_buffer_params):
    B, T, D = x.shape
    assert D % heads == 0
    hd = D // heads
    bf16, f32 = jnp.bfloat16, jnp.float32

    vmem_limit, vmem_cap = _vmem_budget()
    if tq is None:
        # Bigger query tiles on 128 MiB-VMEM parts, <=256 on 64 MiB parts.
        tq = 512 if vmem_cap >= (100 * 1024 * 1024) else 256
    tq = min(tq, T)
    assert T % tq == 0
    num_t = T // tq                    # token tiles (query and KV tiles alike)

    # Fused QKV weight -> one MXU matmul and one weight DMA in kernel 1.
    wqkv = jnp.concatenate([params["wq"], params["wk"], params["wv"]],
                           axis=1).astype(bf16)                    # (D, 3D)
    bqkv = jnp.concatenate([params["bq"], params["bk"], params["bv"]],
                           axis=1).astype(f32)                     # (1, 3D)
    ln1_s = params["ln1_scale"].astype(f32)
    ln1_b = params["ln1_shift"].astype(f32)
    k1_params = [ln1_s, ln1_b, wqkv, bqkv]

    # ---------------- Kernel 1: LN1 + QKV projection (once per token) -------
    qkv_shape = jax.ShapeDtypeStruct((B, heads, T, hd), bf16)
    k1 = functools.partial(qkv_proj_kernel, heads=heads,
                           scale=1.0 / math.sqrt(hd))
    q_hm, k_hm, v_hm = pl.pallas_call(
        k1,
        out_shape=(qkv_shape, qkv_shape, qkv_shape),
        grid=(B, num_t),
        in_specs=[pl.BlockSpec((None, tq, D), lambda b, ti: (b, ti, 0))]
                 + [_param_spec(p.shape, single_buffer_params)
                    for p in k1_params],
        out_specs=(
            pl.BlockSpec((None, heads, tq, hd), lambda b, ti: (b, 0, ti, 0)),
            pl.BlockSpec((None, heads, tq, hd), lambda b, ti: (b, 0, ti, 0)),
            pl.BlockSpec((None, heads, tq, hd), lambda b, ti: (b, 0, ti, 0)),
        ),
        compiler_params=pltpu.CompilerParams(
            dimension_semantics=("parallel", "parallel"),
            vmem_limit_bytes=vmem_limit),
        cost_estimate=pl.CostEstimate(
            flops=int(6 * B * T * D * D),
            transcendentals=int(B * T),
            bytes_accessed=int(B * T * D * 4 + 3 * B * T * D * 2
                               + sum(int(p.size) * p.dtype.itemsize
                                     for p in k1_params))),
    )(x, *k1_params)

    # ---------------- Kernel 2: causal attention + out-proj + LN2 + FFN -----
    k2_params = [
        params["wo"].astype(bf16), params["bo"].astype(f32),
        params["ln2_scale"].astype(f32), params["ln2_shift"].astype(f32),
        params["w1"].astype(bf16), params["b1"].astype(f32),
        params["w2"].astype(bf16), params["b2"].astype(f32),
    ]
    k2 = functools.partial(attn_ffn_kernel, tq=tq, tk=tq)

    def kv_idx(b, qi, kv):
        # Fully-masked KV tiles above the diagonal reuse the previous block
        # index (no extra DMA); their compute is skipped by pl.when anyway.
        return (b, 0, jnp.minimum(kv, qi), 0)

    flops2 = B * (2 * T * T * D + 2 * T * D * D + 16 * T * D * D)
    trans2 = B * (heads * T * T // 2 + 4 * T * D)
    bytes2 = (2 * B * T * D * 4 + 3 * B * T * D * 2
              + sum(int(p.size) * p.dtype.itemsize for p in k2_params))

    return pl.pallas_call(
        k2,
        out_shape=jax.ShapeDtypeStruct((B, T, D), x.dtype),
        grid=(B, num_t, num_t),
        in_specs=[
            pl.BlockSpec((None, tq, D), lambda b, qi, kv: (b, qi, 0)),    # x
            pl.BlockSpec((None, heads, tq, hd),
                         lambda b, qi, kv: (b, 0, qi, 0)),                # q
            pl.BlockSpec((None, heads, tq, hd), kv_idx),                  # k
            pl.BlockSpec((None, heads, tq, hd), kv_idx),                  # v
        ] + [_param_spec(p.shape, single_buffer_params) for p in k2_params],
        out_specs=pl.BlockSpec((None, tq, D), lambda b, qi, kv: (b, qi, 0)),
        scratch_shapes=[
            pltpu.VMEM((heads, tq, 1), f32),     # running max  m
            pltpu.VMEM((heads, tq, 1), f32),     # running sum  l
            pltpu.VMEM((heads, tq, hd), f32),    # running context acc
        ],
        compiler_params=pltpu.CompilerParams(
            dimension_semantics=("parallel", "parallel", "arbitrary"),
            vmem_limit_bytes=vmem_limit),
        cost_estimate=pl.CostEstimate(
            flops=int(flops2), transcendentals=int(trans2),
            bytes_accessed=int(bytes2)),
    )(x, q_hm, k_hm, v_hm, *k2_params)


def transformer_block(x, params, *, heads, tq=None):
    try:
        out = _transformer_block_impl(x, params, heads=heads, tq=tq,
                                      single_buffer_params=True)
        return jax.block_until_ready(out)
    except Exception:
        # TODO(synk): pl.Buffered(1) (single-buffered resident weights) is not
        # accepted by every jax/Mosaic version; fall back to default 2-deep
        # pipelining for the parameter BlockSpecs.
        out = _transformer_block_impl(x, params, heads=heads, tq=tq,
                                      single_buffer_params=False)
        return jax.block_until_ready(out)


# ---- pure-JAX reference (same math, f32) for a correctness check ----
def transformer_block_ref(x, p, *, heads):
    B, T, D = x.shape
    hd = D // heads

    def ln(v, s, b):
        mean = jnp.mean(v, axis=-1, keepdims=True)
        var = jnp.mean((v - mean) ** 2, axis=-1, keepdims=True)
        return (v - mean) / jnp.sqrt(var + EPS) * s + b

    xn = ln(x, p["ln1_scale"], p["ln1_shift"])
    q = xn @ p["wq"] + p["bq"]
    k = xn @ p["wk"] + p["bk"]
    v = xn @ p["wv"] + p["bv"]
    q = q.reshape(B, T, heads, hd).transpose(0, 2, 1, 3)
    k = k.reshape(B, T, heads, hd).transpose(0, 2, 1, 3)
    v = v.reshape(B, T, heads, hd).transpose(0, 2, 1, 3)
    sc = jnp.einsum("bhtd,bhsd->bhts", q, k) / jnp.sqrt(hd)
    mask = jnp.tril(jnp.ones((T, T), bool))
    sc = jnp.where(mask, sc, -1e30)
    w = jax.nn.softmax(sc, axis=-1)
    ctx = jnp.einsum("bhts,bhsd->bhtd", w, v).transpose(0, 2, 1, 3).reshape(B, T, D)
    attn = ctx @ p["wo"] + p["bo"]
    x1 = x + attn
    xn2 = ln(x1, p["ln2_scale"], p["ln2_shift"])
    h1 = xn2 @ p["w1"] + p["b1"]
    h1 = 0.5 * h1 * (1.0 + jnp.tanh(jnp.sqrt(2.0 / jnp.pi) * (h1 + 0.044715 * h1 ** 3)))
    ff = h1 @ p["w2"] + p["b2"]
    return x1 + ff


if __name__ == "__main__":
    # cfg: emb_dim=32, n_heads=4, context_length=8, drop_rate=0.0, qkv_bias=True
    B, T, D, H = 2, 8, 32, 4
    key = jax.random.PRNGKey(0)
    ks = jax.random.split(key, 12)

    x = jax.random.normal(ks[0], (B, T, D), jnp.float32)

    def lin(k, din, dout):
        return 0.1 * jax.random.normal(k, (din, dout), jnp.float32)

    params = {
        "ln1_scale": jnp.ones((1, D), jnp.float32),
        "ln1_shift": jnp.zeros((1, D), jnp.float32),
        "wq": lin(ks[1], D, D), "bq": jnp.zeros((1, D), jnp.float32),
        "wk": lin(ks[2], D, D), "bk": jnp.zeros((1, D), jnp.float32),
        "wv": lin(ks[3], D, D), "bv": jnp.zeros((1, D), jnp.float32),
        "wo": lin(ks[4], D, D),
        "bo": 0.1 * jax.random.normal(ks[5], (1, D), jnp.float32),
        "ln2_scale": 1.0 + 0.1 * jax.random.normal(ks[6], (1, D), jnp.float32),
        "ln2_shift": 0.1 * jax.random.normal(ks[7], (1, D), jnp.float32),
        "w1": lin(ks[8], D, 4 * D),
        "b1": 0.1 * jax.random.normal(ks[9], (1, 4 * D), jnp.float32),
        "w2": lin(ks[10], 4 * D, D),
        "b2": 0.1 * jax.random.normal(ks[11], (1, D), jnp.float32),
    }

    out = transformer_block(x, params, heads=H)
    out = jax.block_until_ready(out)

    ref = transformer_block_ref(x, params, heads=H)
    np.testing.assert_allclose(np.asarray(out), np.asarray(ref),
                               rtol=5e-2, atol=5e-2)
    print("KERNEL_OK")
</pallas_src>

<mosaic_0001>
module attributes {stable_mosaic.version = 11 : i64} {
  func.func @qkv_proj_kernel(%arg0: i32, %arg1: i32, %arg2: memref<1x8x32xf32, #tpu.memory_space<vmem>>, %arg3: memref<1x32xf32, #tpu.memory_space<vmem>>, %arg4: memref<1x32xf32, #tpu.memory_space<vmem>>, %arg5: memref<32x96xbf16, #tpu.memory_space<vmem>>, %arg6: memref<1x96xf32, #tpu.memory_space<vmem>>, %arg7: memref<1x4x8x8xbf16, #tpu.memory_space<vmem>>, %arg8: memref<1x4x8x8xbf16, #tpu.memory_space<vmem>>, %arg9: memref<1x4x8x8xbf16, #tpu.memory_space<vmem>>) attributes {dimension_semantics = [#tpu.dimension_semantics<parallel>, #tpu.dimension_semantics<parallel>], iteration_bounds = array<i64: 2, 1>, scalar_prefetch = 0 : i64, scratch_operands = 0 : i64, tpu.core_type = #tpu.core_type<tc>, window_params = [{transform_indices = @transform_0, window_bounds = array<i64: 1, 8, 32>}, {pipeline_mode = #tpu.pipeline_mode<synchronous>, transform_indices = @transform_1, window_bounds = array<i64: 1, 32>}, {pipeline_mode = #tpu.pipeline_mode<synchronous>, transform_indices = @transform_2, window_bounds = array<i64: 1, 32>}, {pipeline_mode = #tpu.pipeline_mode<synchronous>, transform_indices = @transform_3, window_bounds = array<i64: 32, 96>}, {pipeline_mode = #tpu.pipeline_mode<synchronous>, transform_indices = @transform_4, window_bounds = array<i64: 1, 96>}, {transform_indices = @transform_5, window_bounds = array<i64: 1, 4, 8, 8>}, {transform_indices = @transform_6, window_bounds = array<i64: 1, 4, 8, 8>}, {transform_indices = @transform_7, window_bounds = array<i64: 1, 4, 8, 8>}]} {
    %c0 = arith.constant 0 : index
    %c0_0 = arith.constant 0 : index
    %c0_1 = arith.constant 0 : index
    %0 = vector.load %arg2[%c0, %c0_0, %c0_1] : memref<1x8x32xf32, #tpu.memory_space<vmem>>, vector<1x8x32xf32>
    %1 = vector.shape_cast %0 : vector<1x8x32xf32> to vector<8x32xf32>
    %c0_2 = arith.constant 0 : index
    %c0_3 = arith.constant 0 : index
    %2 = vector.load %arg3[%c0_2, %c0_3] : memref<1x32xf32, #tpu.memory_space<vmem>>, vector<1x32xf32>
    %c0_4 = arith.constant 0 : index
    %c0_5 = arith.constant 0 : index
    %3 = vector.load %arg4[%c0_4, %c0_5] : memref<1x32xf32, #tpu.memory_space<vmem>>, vector<1x32xf32>
    %cst = arith.constant dense<0.000000e+00> : vector<8xf32>
    %4 = vector.multi_reduction <add>, %1, %cst [1] : vector<8x32xf32> to vector<8xf32>
    %5 = vector.shape_cast %4 : vector<8xf32> to vector<8x1xf32>
    %cst_6 = arith.constant 3.200000e+01 : f32
    %6 = vector.broadcast %cst_6 : f32 to vector<8x1xf32>
    %7 = arith.divf %5, %6 : vector<8x1xf32>
    %8 = vector.broadcast %7 : vector<8x1xf32> to vector<8x32xf32>
    %9 = arith.subf %1, %8 : vector<8x32xf32>
    %10 = arith.mulf %9, %9 : vector<8x32xf32>
    %cst_7 = arith.constant dense<0.000000e+00> : vector<8xf32>
    %11 = vector.multi_reduction <add>, %10, %cst_7 [1] : vector<8x32xf32> to vector<8xf32>
    %12 = vector.shape_cast %11 : vector<8xf32> to vector<8x1xf32>
    %cst_8 = arith.constant 3.200000e+01 : f32
    %13 = vector.broadcast %cst_8 : f32 to vector<8x1xf32>
    %14 = arith.divf %12, %13 : vector<8x1xf32>
    %15 = vector.broadcast %7 : vector<8x1xf32> to vector<8x32xf32>
    %16 = arith.subf %1, %15 : vector<8x32xf32>
    %cst_9 = arith.constant 9.99999974E-6 : f32
    %17 = vector.broadcast %cst_9 : f32 to vector<8x1xf32>
    %18 = arith.addf %14, %17 : vector<8x1xf32>
    %19 = math.rsqrt %18 : vector<8x1xf32>
    %20 = vector.broadcast %19 : vector<8x1xf32> to vector<8x32xf32>
    %21 = arith.mulf %16, %20 : vector<8x32xf32>
    %22 = vector.broadcast %2 : vector<1x32xf32> to vector<8x32xf32>
    %23 = arith.mulf %21, %22 : vector<8x32xf32>
    %24 = vector.broadcast %3 : vector<1x32xf32> to vector<8x32xf32>
    %25 = arith.addf %23, %24 : vector<8x32xf32>
    %26 = arith.truncf %25 : vector<8x32xf32> to vector<8x32xbf16>
    %c0_10 = arith.constant 0 : index
    %c0_11 = arith.constant 0 : index
    %27 = vector.load %arg5[%c0_10, %c0_11] : memref<32x96xbf16, #tpu.memory_space<vmem>>, vector<32x96xbf16>
    %cst_12 = arith.constant dense<0.000000e+00> : vector<8x96xf32>
    %28 = tpu.matmul %26, %27, %cst_12 {dimension_numbers = #tpu.dot_dimension_numbers<[1], [0], [0], [1], [0, 0, 1, 1], [], []>} : vector<8x32xbf16>, vector<32x96xbf16>, vector<8x96xf32> -> vector<8x96xf32>
    %c0_13 = arith.constant 0 : index
    %c0_14 = arith.constant 0 : index
    %29 = vector.load %arg6[%c0_13, %c0_14] : memref<1x96xf32, #tpu.memory_space<vmem>>, vector<1x96xf32>
    %30 = vector.broadcast %29 : vector<1x96xf32> to vector<8x96xf32>
    %31 = arith.addf %28, %30 : vector<8x96xf32>
    %32 = vector.extract_strided_slice %31 {offsets = [0, 0], sizes = [8, 32], strides = [1, 1]} : vector<8x96xf32> to vector<8x32xf32>
    %cst_15 = arith.constant 0.353553385 : f32
    %33 = vector.broadcast %cst_15 : f32 to vector<8x32xf32>
    %34 = arith.mulf %32, %33 : vector<8x32xf32>
    %35 = vector.extract_strided_slice %31 {offsets = [0, 32], sizes = [8, 32], strides = [1, 1]} : vector<8x96xf32> to vector<8x32xf32>
    %36 = vector.extract_strided_slice %31 {offsets = [0, 64], sizes = [8, 32], strides = [1, 1]} : vector<8x96xf32> to vector<8x32xf32>
    %37 = vector.shape_cast %34 : vector<8x32xf32> to vector<8x4x8xf32>
    %38 = tpu.transpose %37, [1, 0, 2] : vector<8x4x8xf32> -> vector<4x8x8xf32>
    %39 = arith.truncf %38 : vector<4x8x8xf32> to vector<4x8x8xbf16>
    %c0_16 = arith.constant 0 : index
    %c0_17 = arith.constant 0 : index
    %c0_18 = arith.constant 0 : index
    %c0_19 = arith.constant 0 : index
    %40 = vector.load %arg7[%c0_16, %c0_17, %c0_18, %c0_19] : memref<1x4x8x8xbf16, #tpu.memory_space<vmem>>, vector<1x4x8x8xbf16>
    %41 = vector.shape_cast %40 : vector<1x4x8x8xbf16> to vector<4x8x8xbf16>
    %42 = vector.shape_cast %39 : vector<4x8x8xbf16> to vector<1x4x8x8xbf16>
    tpu.vector_store %arg7[%c0_16, %c0_17, %c0_18, %c0_19], %42 {strides = array<i32>} : memref<1x4x8x8xbf16, #tpu.memory_space<vmem>>, vector<1x4x8x8xbf16>,
    %43 = vector.shape_cast %35 : vector<8x32xf32> to vector<8x4x8xf32>
    %44 = tpu.transpose %43, [1, 0, 2] : vector<8x4x8xf32> -> vector<4x8x8xf32>
    %45 = arith.truncf %44 : vector<4x8x8xf32> to vector<4x8x8xbf16>
    %c0_20 = arith.constant 0 : index
    %c0_21 = arith.constant 0 : index
    %c0_22 = arith.constant 0 : index
    %c0_23 = arith.constant 0 : index
    %46 = vector.load %arg8[%c0_20, %c0_21, %c0_22, %c0_23] : memref<1x4x8x8xbf16, #tpu.memory_space<vmem>>, vector<1x4x8x8xbf16>
    %47 = vector.shape_cast %46 : vector<1x4x8x8xbf16> to vector<4x8x8xbf16>
    %48 = vector.shape_cast %45 : vector<4x8x8xbf16> to vector<1x4x8x8xbf16>
    tpu.vector_store %arg8[%c0_20, %c0_21, %c0_22, %c0_23], %48 {strides = array<i32>} : memref<1x4x8x8xbf16, #tpu.memory_space<vmem>>, vector<1x4x8x8xbf16>,
    %49 = vector.shape_cast %36 : vector<8x32xf32> to vector<8x4x8xf32>
    %50 = tpu.transpose %49, [1, 0, 2] : vector<8x4x8xf32> -> vector<4x8x8xf32>
    %51 = arith.truncf %50 : vector<4x8x8xf32> to vector<4x8x8xbf16>
    %c0_24 = arith.constant 0 : index
    %c0_25 = arith.constant 0 : index
    %c0_26 = arith.constant 0 : index
    %c0_27 = arith.constant 0 : index
    %52 = vector.load %arg9[%c0_24, %c0_25, %c0_26, %c0_27] : memref<1x4x8x8xbf16, #tpu.memory_space<vmem>>, vector<1x4x8x8xbf16>
    %53 = vector.shape_cast %52 : vector<1x4x8x8xbf16> to vector<4x8x8xbf16>
    %54 = vector.shape_cast %51 : vector<4x8x8xbf16> to vector<1x4x8x8xbf16>
    tpu.vector_store %arg9[%c0_24, %c0_25, %c0_26, %c0_27], %54 {strides = array<i32>} : memref<1x4x8x8xbf16, #tpu.memory_space<vmem>>, vector<1x4x8x8xbf16>,
    return
  }
  func.func @transform_0(%arg0: i32, %arg1: i32) -> (i32, i32, i32) {
    %c0_i32 = arith.constant 0 : i32
    %c0_i32_0 = arith.constant 0 : i32
    return %arg0, %arg1, %c0_i32 : i32, i32, i32
  }
  func.func @transform_1(%arg0: i32, %arg1: i32) -> (i32, i32) {
    %c0_i32 = arith.constant 0 : i32
    %c0_i32_0 = arith.constant 0 : i32
    %c0_i32_1 = arith.constant 0 : i32
    return %c0_i32, %c0_i32_0 : i32, i32
  }
  func.func @transform_2(%arg0: i32, %arg1: i32) -> (i32, i32) {
    %c0_i32 = arith.constant 0 : i32
    %c0_i32_0 = arith.constant 0 : i32
    %c0_i32_1 = arith.constant 0 : i32
    return %c0_i32, %c0_i32_0 : i32, i32
  }
  func.func @transform_3(%arg0: i32, %arg1: i32) -> (i32, i32) {
    %c0_i32 = arith.constant 0 : i32
    %c0_i32_0 = arith.constant 0 : i32
    %c0_i32_1 = arith.constant 0 : i32
    return %c0_i32, %c0_i32_0 : i32, i32
  }
  func.func @transform_4(%arg0: i32, %arg1: i32) -> (i32, i32) {
    %c0_i32 = arith.constant 0 : i32
    %c0_i32_0 = arith.constant 0 : i32
    %c0_i32_1 = arith.constant 0 : i32
    return %c0_i32, %c0_i32_0 : i32, i32
  }
  func.func @transform_5(%arg0: i32, %arg1: i32) -> (i32, i32, i32, i32) {
    %c0_i32 = arith.constant 0 : i32
    %c0_i32_0 = arith.constant 0 : i32
    %c0_i32_1 = arith.constant 0 : i32
    return %arg0, %c0_i32, %arg1, %c0_i32_0 : i32, i32, i32, i32
  }
  func.func @transform_6(%arg0: i32, %arg1: i32) -> (i32, i32, i32, i32) {
    %c0_i32 = arith.constant 0 : i32
    %c0_i32_0 = arith.constant 0 : i32
    %c0_i32_1 = arith.constant 0 : i32
    return %arg0, %c0_i32, %arg1, %c0_i32_0 : i32, i32, i32, i32
  }
  func.func @transform_7(%arg0: i32, %arg1: i32) -> (i32, i32, i32, i32) {
    %c0_i32 = arith.constant 0 : i32
    %c0_i32_0 = arith.constant 0 : i32
    %c0_i32_1 = arith.constant 0 : i32
    return %arg0, %c0_i32, %arg1, %c0_i32_0 : i32, i32, i32, i32
  }
}

module attributes {stable_mosaic.version = 11 : i64} {
  func.func @qkv_proj_kernel(%arg0: i32, %arg1: i32, %arg2: memref<1x8x32xf32, #tpu.memory_space<vmem>>, %arg3: memref<1x32xf32, #tpu.memory_space<vmem>>, %arg4: memref<1x32xf32, #tpu.memory_space<vmem>>, %arg5: memref<32x96xbf16, #tpu.memory_space<vmem>>, %arg6: memref<1x96xf32, #tpu.memory_space<vmem>>, %arg7: memref<1x4x8x8xbf16, #tpu.memory_space<vmem>>, %arg8: memref<1x4x8x8xbf16, #tpu.memory_space<vmem>>, %arg9: memref<1x4x8x8xbf16, #tpu.memory_space<vmem>>) attributes {dimension_semantics = [#tpu.dimension_semantics<parallel>, #tpu.dimension_semantics<parallel>], iteration_bounds = array<i64: 2, 1>, scalar_prefetch = 0 : i64, scratch_operands = 0 : i64, tpu.core_type = #tpu.core_type<tc>, window_params = [{transform_indices = @transform_0, window_bounds = array<i64: 1, 8, 32>}, {pipeline_mode = #tpu.pipeline_mode<synchronous>, transform_indices = @transform_1, window_bounds = array<i64: 1, 32>}, {pipeline_mode = #tpu.pipeline_mode<synchronous>, transform_indices = @transform_2, window_bounds = array<i64: 1, 32>}, {pipeline_mode = #tpu.pipeline_mode<synchronous>, transform_indices = @transform_3, window_bounds = array<i64: 32, 96>}, {pipeline_mode = #tpu.pipeline_mode<synchronous>, transform_indices = @transform_4, window_bounds = array<i64: 1, 96>}, {transform_indices = @transform_5, window_bounds = array<i64: 1, 4, 8, 8>}, {transform_indices = @transform_6, window_bounds = array<i64: 1, 4, 8, 8>}, {transform_indices = @transform_7, window_bounds = array<i64: 1, 4, 8, 8>}]} {
    %c0 = arith.constant 0 : index
    %c0_0 = arith.constant 0 : index
    %c0_1 = arith.constant 0 : index
    %0 = vector.load %arg2[%c0, %c0_0, %c0_1] : memref<1x8x32xf32, #tpu.memory_space<vmem>>, vector<1x8x32xf32>
    %1 = vector.shape_cast %0 : vector<1x8x32xf32> to vector<8x32xf32>
    %c0_2 = arith.constant 0 : index
    %c0_3 = arith.constant 0 : index
    %2 = vector.load %arg3[%c0_2, %c0_3] : memref<1x32xf32, #tpu.memory_space<vmem>>, vector<1x32xf32>
    %c0_4 = arith.constant 0 : index
    %c0_5 = arith.constant 0 : index
    %3 = vector.load %arg4[%c0_4, %c0_5] : memref<1x32xf32, #tpu.memory_space<vmem>>, vector<1x32xf32>
    %cst = arith.constant dense<0.000000e+00> : vector<8xf32>
    %4 = vector.multi_reduction <add>, %1, %cst [1] : vector<8x32xf32> to vector<8xf32>
    %5 = vector.shape_cast %4 : vector<8xf32> to vector<8x1xf32>
    %cst_6 = arith.constant 3.200000e+01 : f32
    %6 = vector.broadcast %cst_6 : f32 to vector<8x1xf32>
    %7 = arith.divf %5, %6 : vector<8x1xf32>
    %8 = vector.broadcast %7 : vector<8x1xf32> to vector<8x32xf32>
    %9 = arith.subf %1, %8 : vector<8x32xf32>
    %10 = arith.mulf %9, %9 : vector<8x32xf32>
    %cst_7 = arith.constant dense<0.000000e+00> : vector<8xf32>
    %11 = vector.multi_reduction <add>, %10, %cst_7 [1] : vector<8x32xf32> to vector<8xf32>
    %12 = vector.shape_cast %11 : vector<8xf32> to vector<8x1xf32>
    %cst_8 = arith.constant 3.200000e+01 : f32
    %13 = vector.broadcast %cst_8 : f32 to vector<8x1xf32>
    %14 = arith.divf %12, %13 : vector<8x1xf32>
    %15 = vector.broadcast %7 : vector<8x1xf32> to vector<8x32xf32>
    %16 = arith.subf %1, %15 : vector<8x32xf32>
    %cst_9 = arith.constant 9.99999974E-6 : f32
    %17 = vector.broadcast %cst_9 : f32 to vector<8x1xf32>
    %18 = arith.addf %14, %17 : vector<8x1xf32>
    %19 = math.rsqrt %18 : vector<8x1xf32>
    %20 = vector.broadcast %19 : vector<8x1xf32> to vector<8x32xf32>
    %21 = arith.mulf %16, %20 : vector<8x32xf32>
    %22 = vector.broadcast %2 : vector<1x32xf32> to vector<8x32xf32>
    %23 = arith.mulf %21, %22 : vector<8x32xf32>
    %24 = vector.broadcast %3 : vector<1x32xf32> to vector<8x32xf32>
    %25 = arith.addf %23, %24 : vector<8x32xf32>
    %26 = arith.truncf %25 : vector<8x32xf32> to vector<8x32xbf16>
    %c0_10 = arith.constant 0 : index
    %c0_11 = arith.constant 0 : index
    %27 = vector.load %arg5[%c0_10, %c0_11] : memref<32x96xbf16, #tpu.memory_space<vmem>>, vector<32x96xbf16>
    %cst_12 = arith.constant dense<0.000000e+00> : vector<8x96xf32>
    %28 = tpu.matmul %26, %27, %cst_12 {dimension_numbers = #tpu.dot_dimension_numbers<[1], [0], [0], [1], [0, 0, 1, 1], [], []>} : vector<8x32xbf16>, vector<32x96xbf16>, vector<8x96xf32> -> vector<8x96xf32>
    %c0_13 = arith.constant 0 : index
    %c0_14 = arith.constant 0 : index
    %29 = vector.load %arg6[%c0_13, %c0_14] : memref<1x96xf32, #tpu.memory_space<vmem>>, vector<1x96xf32>
    %30 = vector.broadcast %29 : vector<1x96xf32> to vector<8x96xf32>
    %31 = arith.addf %28, %30 : vector<8x96xf32>
    %32 = vector.extract_strided_slice %31 {offsets = [0, 0], sizes = [8, 32], strides = [1, 1]} : vector<8x96xf32> to vector<8x32xf32>
    %cst_15 = arith.constant 0.353553385 : f32
    %33 = vector.broadcast %cst_15 : f32 to vector<8x32xf32>
    %34 = arith.mulf %32, %33 : vector<8x32xf32>
    %35 = vector.extract_strided_slice %31 {offsets = [0, 32], sizes = [8, 32], strides = [1, 1]} : vector<8x96xf32> to vector<8x32xf32>
    %36 = vector.extract_strided_slice %31 {offsets = [0, 64], sizes = [8, 32], strides = [1, 1]} : vector<8x96xf32> to vector<8x32xf32>
    %37 = vector.shape_cast %34 : vector<8x32xf32> to vector<8x4x8xf32>
    %38 = tpu.transpose %37, [1, 0, 2] : vector<8x4x8xf32> -> vector<4x8x8xf32>
    %39 = arith.truncf %38 : vector<4x8x8xf32> to vector<4x8x8xbf16>
    %c0_16 = arith.constant 0 : index
    %c0_17 = arith.constant 0 : index
    %c0_18 = arith.constant 0 : index
    %c0_19 = arith.constant 0 : index
    %40 = vector.load %arg7[%c0_16, %c0_17, %c0_18, %c0_19] : memref<1x4x8x8xbf16, #tpu.memory_space<vmem>>, vector<1x4x8x8xbf16>
    %41 = vector.shape_cast %40 : vector<1x4x8x8xbf16> to vector<4x8x8xbf16>
    %42 = vector.shape_cast %39 : vector<4x8x8xbf16> to vector<1x4x8x8xbf16>
    tpu.vector_store %arg7[%c0_16, %c0_17, %c0_18, %c0_19], %42 {strides = array<i32>} : memref<1x4x8x8xbf16, #tpu.memory_space<vmem>>, vector<1x4x8x8xbf16>,
    %43 = vector.shape_cast %35 : vector<8x32xf32> to vector<8x4x8xf32>
    %44 = tpu.transpose %43, [1, 0, 2] : vector<8x4x8xf32> -> vector<4x8x8xf32>
    %45 = arith.truncf %44 : vector<4x8x8xf32> to vector<4x8x8xbf16>
    %c0_20 = arith.constant 0 : index
    %c0_21 = arith.constant 0 : index
    %c0_22 = arith.constant 0 : index
    %c0_23 = arith.constant 0 : index
    %46 = vector.load %arg8[%c0_20, %c0_21, %c0_22, %c0_23] : memref<1x4x8x8xbf16, #tpu.memory_space<vmem>>, vector<1x4x8x8xbf16>
    %47 = vector.shape_cast %46 : vector<1x4x8x8xbf16> to vector<4x8x8xbf16>
    %48 = vector.shape_cast %45 : vector<4x8x8xbf16> to vector<1x4x8x8xbf16>
    tpu.vector_store %arg8[%c0_20, %c0_21, %c0_22, %c0_23], %48 {strides = array<i32>} : memref<1x4x8x8xbf16, #tpu.memory_space<vmem>>, vector<1x4x8x8xbf16>,
    %49 = vector.shape_cast %36 : vector<8x32xf32> to vector<8x4x8xf32>
    %50 = tpu.transpose %49, [1, 0, 2] : vector<8x4x8xf32> -> vector<4x8x8xf32>
    %51 = arith.truncf %50 : vector<4x8x8xf32> to vector<4x8x8xbf16>
    %c0_24 = arith.constant 0 : index
    %c0_25 = arith.constant 0 : index
    %c0_26 = arith.constant 0 : index
    %c0_27 = arith.constant 0 : index
    %52 = vector.load %arg9[%c0_24, %c0_25, %c0_26, %c0_27] : memref<1x4x8x8xbf16, #tpu.memory_space<vmem>>, vector<1x4x8x8xbf16>
    %53 = vector.shape_cast %52 : vector<1x4x8x8xbf16> to vector<4x8x8xbf16>
    %54 = vector.shape_cast %51 : vector<4x8x8xbf16> to vector<1x4x8x8xbf16>
    tpu.vector_store %arg9[%c0_24, %c0_25, %c0_26, %c0_27], %54 {strides = array<i32>} : memref<1x4x8x8xbf16, #tpu.memory_space<vmem>>, vector<1x4x8x8xbf16>,
    return
  }
  func.func @transform_0(%arg0: i32, %arg1: i32) -> (i32, i32, i32) {
    %c0_i32 = arith.constant 0 : i32
    %c0_i32_0 = arith.constant 0 : i32
    return %arg0, %arg1, %c0_i32 : i32, i32, i32
  }
  func.func @transform_1(%arg0: i32, %arg1: i32) -> (i32, i32) {
    %c0_i32 = arith.constant 0 : i32
    %c0_i32_0 = arith.constant 0 : i32
    %c0_i32_1 = arith.constant 0 : i32
    return %c0_i32, %c0_i32_0 : i32, i32
  }
  func.func @transform_2(%arg0: i32, %arg1: i32) -> (i32, i32) {
    %c0_i32 = arith.constant 0 : i32
    %c0_i32_0 = arith.constant 0 : i32
    %c0_i32_1 = arith.constant 0 : i32
    return %c0_i32, %c0_i32_0 : i32, i32
  }
  func.func @transform_3(%arg0: i32, %arg1: i32) -> (i32, i32) {
    %c0_i32 = arith.constant 0 : i32
    %c0_i32_0 = arith.constant 0 : i32
    %c0_i32_1 = arith.constant 0 : i32
    return %c0_i32, %c0_i32_0 : i32, i32
  }
  func.func @transform_4(%arg0: i32, %arg1: i32) -> (i32, i32) {
    %c0_i32 = arith.constant 0 : i32
    %c0_i32_0 = arith.constant 0 : i32
    %c0_i32_1 = arith.constant 0 : i32
    return %c0_i32, %c0_i32_0 : i32, i32
  }
  func.func @transform_5(%arg0: i32, %arg1: i32) -> (i32, i32, i32, i32) {
    %c0_i32 = arith.constant 0 : i32
    %c0_i32_0 = arith.constant 0 : i32
    %c0_i32_1 = arith.constant 0 : i32
    return %arg0, %c0_i32, %arg1, %c0_i32_0 : i32, i32, i32, i32
  }
  func.func @transform_6(%arg0: i32, %arg1: i32) -> (i32, i32, i32, i32) {
    %c0_i32 = arith.constant 0 : i32
    %c0_i32_0 = arith.constant 0 : i32
    %c0_i32_1 = arith.constant 0 : i32
    return %arg0, %c0_i32, %arg1, %c0_i32_0 : i32, i32, i32, i32
  }
  func.func @transform_7(%arg0: i32, %arg1: i32) -> (i32, i32, i32, i32) {
    %c0_i32 = arith.constant 0 : i32
    %c0_i32_0 = arith.constant 0 : i32
    %c0_i32_1 = arith.constant 0 : i32
    return %arg0, %c0_i32, %arg1, %c0_i32_0 : i32, i32, i32, i32
  }
}

</mosaic_0001>

<bundles_post_ra>
// kernel: tpu_custom_call.1
= control target key start
LH: loop header
LB: loop body
LE: loop exit
PB: predicated region body
PF: predicated region fallthrough
CT: control target
= control target key end

     0   :  { %s2206_s0 = inlined_call_operand.hbm [shape: f32[2,8,32], index: 0, kind: input, shape index: {}]   ;;  %s2207_s1 = inlined_call_operand.hbm [shape: f32[1,32], index: 1, kind: input, shape index: {}]   ;;  %s2208_s2 = inlined_call_operand.hbm [shape: f32[1,32], index: 2, kind: input, shape index: {}]   ;;  %s2209_s3 = inlined_call_operand.hbm [shape: bf16[32,96], index: 3, kind: input, shape index: {}]   ;;  %s2210_s4 = inlined_call_operand.hbm [shape: f32[1,96], index: 4, kind: input, shape index: {}]   ;;  %s2211_s5 = inlined_call_operand.hbm [shape: bf16[2,4,8,8], index: 5, kind: output, shape index: {0}]   ;;  %s2212_s6 = inlined_call_operand.hbm [shape: bf16[2,4,8,8], index: 6, kind: output, shape index: {1}]   ;;  %s2213_s7 = inlined_call_operand.hbm [shape: bf16[2,4,8,8], index: 7, kind: output, shape index: {2}]  }
   0x1   :  { %2218 = sst [smem:[#allocation20_spill]] %s2207_s1 }
   0x2   :  { %2219 = sst [smem:[#allocation21_spill]] %s2208_s2 }
   0x3   :  { %13 = vsyncpa [#allocation3], 0 }
   0x4   :  { %15 = vsyncpa [#allocation3 + $0x1], 0 }
   0x5   :  { %16 = vsyncpa [#allocation6], 0 }
   0x6   :  { %17 = vsyncpa [#allocation9], 0 }
   0x7   :  { %18 = vsyncpa [#allocation4], 0 }
   0x8   :  { %20 = vsyncpa [#allocation4 + $0x1], 0 }
   0x9   :  { %21 = vsyncpa [#allocation13], 0 }
   0xa   :  { %23 = vsyncpa [#allocation13 + $0x1], 0  ;;  %s1745_s24 = smov 0   ;;  %s1747_s25 = smov 0  }
   0xb   :  { %s1749_s26 = smov 0   ;;  %s1751_s27 = smov 0  }
   0xc   :  { %s1753_s28 = smov 0   ;;  %s1755_s29 = smov 0  }
   0xd LB: > { %s1776_s30 = sadd.s32 4294967295, %s1683_s29   ;;  %p1208_p0 = scmp.ge.s32.totalorder %s1683_s29, 1  ;;  %s1683_s29 = sphi %s1755_s29, %s29_s29   ;;  %s1679_s28 = sphi %s1753_s28, %s2244_s28   ;;  %s1675_s27 = sphi %s1751_s27, %s2243_s27   ;;  %s1671_s26 = sphi %s1749_s26, %s2242_s26   ;;  %s1667_s25 = sphi %s1747_s25, %s2241_s25   ;;  %s1663_s24 = sphi %s1745_s24, %s2240_s24  }
   0xe   : > { %p2214_p1 = scmp.eq.s32.totalorder %s1776_s30, 0  ;;  %p242_p2 = scmp.lt.s32.totalorder %s1683_s29, 3 }
   0xf   : > { %s1685_s9 = smov [#allocation5]   ;;  %s1686_s11 = smov [#allocation8]  }
  0x10   : > { %p1781_p3 = pnand %p1208_p0, %p242_p2  ;;  %s255_s10 = sshll.u32 %s1685_s9, 4  ;;  %s256_s10 = int_to_ptr.vmem [resolvable:$true] %s255_s10 }
  0x11   : > { %s276_s12 = sshll.u32 %s1686_s11, 4  ;;  %s1687_s14 = smov [#allocation7]   ;;  %s1794_s12 = int_to_ptr.vmem [resolvable:$true] %s276_s12 }
  0x12   : > { %s2220_s8 = scalar_select %p1781_p3, 1, 0 }
  0x13   : > { %p1286_p5 = pneg %p1781_p3  ;;  %s1796_s15 = sshll.u32 %s1687_s14, 4  ;;  %s267_s15 = int_to_ptr.vmem [resolvable:$true] %s1796_s15 }
  0x14   : > { %s2222_s1 = sld [smem:[#allocation20_spill]] }
  0x15   : > { %p1790_p6 = pnand %p1286_p5, %p2214_p1 }
  0x17   : > { %p1806_p8 = pneg %p1790_p6 }
  0x1a   : > { %s1391_s18 = scalar_lea.hbm %s2222_s1, 16 }
  0x1b   : > { %p1392_p7 = scmp.ne.s32.totalorder %s2222_s1, %s1391_s18  ;;  %p1398_p11 = scmp.lt.u32.totalorder %s1391_s18, %s2222_s1 }
  0x1d   : > { %p1394_p9 = pnand %p1806_p8, %p1392_p7 }
  0x1f   : > { %p1395_p10 = pneg %p1394_p9 }
  0x21   : > { %p1400_p12 = pnand %p1398_p11, %p1395_p10 }
  0x23   : > { %1403 = shalt.err (!%p1400_p12)
}
  0x24   : > { %s1404_s9 = scalar_lea.vmem %s256_s10, 16  ;;  %s1411_s11 = scalar_lea.vmem %s256_s10, 32 }
  0x25   : > { %p1405_p13 = scmp.ne.s32.totalorder %s256_s10, %s1404_s9  ;;  %p1412_p5 = scmp.lt.s32.totalorder %s256_s10, %s256_s10 }
  0x26   : > { %p1413_p4 = scmp.lt.s32.totalorder %s1411_s11, %s1404_s9 }
  0x27   : > { %p1407_p0 = pnand %p1405_p13, %p1806_p8 }
  0x28   : > { %p1414_p1 = por %p1413_p4, %p1412_p5 }
  0x29   : > { %p1408_p2 = pneg %p1407_p0 }
  0x2b   : > { %p1415_p3 = pnand %p1414_p1, %p1408_p2 }
  0x2d   : > { %1418 = shalt.err (!%p1415_p3)
}
  0x2e   : > { %1289 = dma.hbm_to_vmem [thread:$0]  (!%p1790_p6), %s2222_s1, 16, %s256_s10, [#allocation6]  }
  0x2f   : > { %s1419_s19 = scalar_lea.hbm %s2209_s3, 256 }
  0x30   : > { %p1420_p7 = scmp.ne.s32.totalorder %s2209_s3, %s1419_s19  ;;  %p1426_p1 = scmp.lt.u32.totalorder %s1419_s19, %s2209_s3 }
  0x32   : > { %p1422_p9 = pnand %p1420_p7, %p1806_p8 }
  0x34   : > { %p1423_p4 = pneg %p1422_p9 }
  0x36   : > { %p1428_p3 = pnand %p1426_p1, %p1423_p4 }
  0x38   : > { %1431 = shalt.err (!%p1428_p3)
}
  0x39   : > { %s1432_s10 = scalar_lea.vmem %s1794_s12, 256  ;;  %p1440_p13 = scmp.lt.s32.totalorder %s1794_s12, %s1794_s12 }
  0x3a   : > { %p1433_p10 = scmp.ne.s32.totalorder %s1794_s12, %s1432_s10  ;;  %p1441_p0 = scmp.lt.s32.totalorder %s1432_s10, %s1432_s10 }
  0x3c   : > { %p1435_p11 = pnand %p1433_p10, %p1806_p8  ;;  %p1442_p2 = por %p1441_p0, %p1440_p13 }
  0x3e   : > { %p1436_p12 = pneg %p1435_p11 }
  0x40   : > { %p1443_p5 = pnand %p1442_p2, %p1436_p12 }
  0x42   : > { %1446 = shalt.err (!%p1443_p5)
}
  0x43   : > { %s1688_s11 = smov 64   ;;  %s1689_s14 = smov 4  }
  0x44   : > { %1295 = dma.hbm_to_vmem [thread:$0]  (!%p1790_p6), %s2209_s3, 256, %s1794_s12, [#allocation9], %s1688_s11, %s1688_s11, %s1689_s14  }
  0x45   : > { %s2224_s2 = sld [smem:[#allocation21_spill]] }
  0x4b   : > { %s1447_s20 = scalar_lea.hbm %s2224_s2, 16 }
  0x4c   : > { %p1448_p7 = scmp.ne.s32.totalorder %s2224_s2, %s1447_s20  ;;  %p1454_p1 = scmp.lt.u32.totalorder %s1447_s20, %s2224_s2 }
  0x4e   : > { %p1450_p9 = pnand %p1448_p7, %p1806_p8 }
  0x50   : > { %p1451_p4 = pneg %p1450_p9 }
  0x52   : > { %p1456_p3 = pnand %p1454_p1, %p1451_p4 }
  0x54   : > { %1459 = shalt.err (!%p1456_p3)
}
  0x55   : > { %s1460_s16 = scalar_lea.vmem %s267_s15, 16  ;;  %s1467_s12 = scalar_lea.vmem %s267_s15, 32 }
  0x56   : > { %p1461_p10 = scmp.ne.s32.totalorder %s267_s15, %s1460_s16  ;;  %p1468_p13 = scmp.lt.s32.totalorder %s267_s15, %s267_s15 }
  0x57   : > { %p1469_p0 = scmp.lt.s32.totalorder %s1467_s12, %s1460_s16 }
  0x58   : > { %p1463_p11 = pnand %p1461_p10, %p1806_p8 }
  0x59   : > { %p1470_p2 = por %p1469_p0, %p1468_p13 }
  0x5a   : > { %p1464_p12 = pneg %p1463_p11 }
  0x5c   : > { %p1471_p5 = pnand %p1470_p2, %p1464_p12 }
  0x5e   : > { %1474 = shalt.err (!%p1471_p5)
}
  0x5f   : > { %1292 = dma.hbm_to_vmem [thread:$0]  (!%p1790_p6), %s2224_s2, 16, %s267_s15, [#allocation6]  }
  0x60   : > { %s1690_s17 = smov [#allocation10]   ;;  %s1475_s22 = scalar_lea.hbm %s2210_s4, 16 }
  0x61   : > { %s290_s18 = sshll.u32 %s1690_s17, 4  ;;  %p1476_p7 = scmp.ne.s32.totalorder %s2210_s4, %s1475_s22  ;;  %s291_s18 = int_to_ptr.vmem [resolvable:$true] %s290_s18 }
  0x62   : > { %p1482_p1 = scmp.lt.u32.totalorder %s1475_s22, %s2210_s4 }
  0x63   : > { %p1478_p9 = pnand %p1476_p7, %p1806_p8 }
  0x65   : > { %p1479_p4 = pneg %p1478_p9 }
  0x67   : > { %p1484_p3 = pnand %p1482_p1, %p1479_p4 }
  0x69   : > { %1487 = shalt.err (!%p1484_p3)
}
  0x6a   : > { %s1488_s15 = scalar_lea.vmem %s291_s18, 16  ;;  %s1495_s12 = scalar_lea.vmem %s291_s18, 32 }
  0x6b   : > { %p1489_p10 = scmp.ne.s32.totalorder %s291_s18, %s1488_s15  ;;  %p1496_p13 = scmp.lt.s32.totalorder %s291_s18, %s291_s18 }
  0x6c   : > { %p1497_p0 = scmp.lt.s32.totalorder %s1495_s12, %s1488_s15 }
  0x6d   : > { %p1491_p11 = pnand %p1489_p10, %p1806_p8 }
  0x6e   : > { %p1498_p2 = por %p1497_p0, %p1496_p13 }
  0x6f   : > { %p1492_p12 = pneg %p1491_p11 }
  0x71   : > { %p1499_p5 = pnand %p1498_p2, %p1492_p12 }
  0x73   : > { %1502 = shalt.err (!%p1499_p5)
}
  0x74   : > { %1298 = dma.hbm_to_vmem [thread:$0]  (!%p1790_p6), %s2210_s4, 16, %s291_s18, [#allocation9]  }
  0x75   : > { %s2216_s21 = sadd.s32 4294967294, %s1683_s29   ;;  %s41_s17 = sadd.s32 1, %s1679_s28 }
  0x76   : > { %p43_p8 = scmp.ge.s32.totalorder %s41_s17, 2  ;;  %s50_s13 = sadd.s32 1, %s1671_s26 }
  0x77   : > { %p57_p7 = scmp.ne.s32.totalorder %s1671_s26, %s1667_s25  ;;  %p58_p9 = scmp.eq.s32.totalorder %s1683_s29, 0 }
  0x78   : > { %s2246_s17 = smov (%p43_p8, %s41_s17), 0  ;;  %p63_p1 = scmp.ne.s32.totalorder %s1667_s25, %s1663_s24 }
  0x79   : > { %p1890_p4 = por %p58_p9, %p57_p7  ;;  %s45_s18 = ssub.s32 %s1679_s28, %s2246_s17 }
  0x7a   : > { %p173_p6 = scmp.eq.s32.totalorder %s1776_s30, 1  ;;  %p48_p3 = scmp.eq.s32.totalorder %s45_s18, 0 }
  0x7b   : > { %p2226_p10 = scmp.eq.s32.totalorder %s1776_s30, 0  ;;  %p179_p13 = scmp.eq.s32.totalorder %s2216_s21, 1 }
  0x7c   : > { %p1905_p12 = por %p173_p6, %p57_p7  ;;  %p1317_p2 = scmp.lt.s32.totalorder %s1683_s29, 2 }
  0x7d   : > { %p1901_p11 = por %p2226_p10, %p63_p1  ;;  %p1914_p0 = por %p179_p13, %p63_p1 }
  0x7e   : > { %s2228_s22 = scalar_select %p1905_p12, 1, 0 }
  0x7f   : > { %s1912_s23 = scalar_select %p48_p3, %s1671_s26, %s50_s13  }
  0x80   : > { %s2229_s9 = scalar_select %p1914_p0, 1, 0 }
  0x81   : > { %s301_s10 = sand.u32 1, %s1671_s26   ;;  %s1215_s16 = sshll.u32 %s1679_s28, 7 }
  0x82   : > { %s1214_s15 = sshll.u32 %s301_s10, 3  ;;  %s1924_s14 = scalar_lea.hbm %s2206_s0, %s1215_s16 }
  0x83   : > { %s305_s18 = scalar_lea.vmem [#allocation2], %s1214_s15  ;;  %p1928_p5 = pnand %p1317_p2, %p1890_p4 }
  0x84   : > { %s313_s13 = sshll.u32 %s305_s18, 4  ;;  %s302_s1 = scalar_lea.sflag [#allocation3], %s301_s10  ;;  %s1932_s13 = int_to_ptr.vmem [resolvable:$true] %s313_s13 }
  0x85   : > { %s1503_s2 = scalar_lea.hbm %s1924_s14, 128  ;;  %p1505_p7 = pneg %p1928_p5 }
  0x86   : > { %p1504_p8 = scmp.ne.s32.totalorder %s1924_s14, %s1503_s2  ;;  %s1508_s19 = scalar_lea.hbm %s2206_s0, 256 }
  0x87   : > { %p1509_p4 = scmp.lt.u32.totalorder %s1924_s14, %s2206_s0  ;;  %p1510_p6 = scmp.lt.u32.totalorder %s1508_s19, %s1503_s2 }
  0x88   : > { %p1506_p9 = pnand %p1505_p7, %p1504_p8  ;;  %p1512_p10 = scmp.lt.u32.totalorder %s1503_s2, %s1924_s14 }
  0x89   : > { %p1511_p3 = por %p1510_p6, %p1509_p4 }
  0x8a   : > { %p1507_p1 = pneg %p1506_p9 }
  0x8b   : > { %p1513_p13 = por %p1512_p10, %p1511_p3 }
  0x8d   : > { %p1514_p2 = pnand %p1513_p13, %p1507_p1 }
  0x8f   : > { %1517 = shalt.err (!%p1514_p2)
}
  0x90   : > { %s1518_s10 = scalar_lea.vmem %s1932_s13, 128  ;;  %s1691_s18 = smov [#allocation2]  }
  0x91   : > { %p1519_p8 = scmp.ne.s32.totalorder %s1932_s13, %s1518_s10  ;;  %s1523_s16 = sshll.u32 %s1691_s18, 4  ;;  %s1524_s16 = int_to_ptr.vmem [resolvable:$false] %s1523_s16 }
  0x92   : > { %s1525_s15 = scalar_lea.vmem %s1524_s16, 256  ;;  %p1526_p12 = scmp.lt.s32.totalorder %s1932_s13, %s1524_s16 }
  0x93   : > { %p1521_p9 = pnand %p1519_p8, %p1505_p7  ;;  %p1527_p4 = scmp.lt.s32.totalorder %s1525_s15, %s1518_s10 }
  0x95   : > { %p1522_p0 = pneg %p1521_p9  ;;  %p1528_p6 = por %p1527_p4, %p1526_p12 }
  0x97   : > { %p1529_p3 = pnand %p1528_p6, %p1522_p0 }
  0x99   : > { %1532 = shalt.err (!%p1529_p3)
}
  0x9a   : > { %1302 = dma.hbm_to_vmem [thread:$0]  (!%p1928_p5), %s1924_s14, 128, %s1932_s13, %s302_s1  }
  0x9b   : > { %p2231_p1 = scmp.ne.s32.totalorder %s2220_s8, 0 }
  0x9c   : > { %s1962_s2 = sand.u32 (!%p2231_p1), 1, %s1667_s25  }
  0x9d   : > { %322 = sbr.rel (%p2231_p1) target bundleno = 1004 (0x3ec), region = 40  ;;  %s1217_s19 = sshll.u32 (!%p2231_p1), %s1962_s2, 3 }
  0x9e   : > { %s325_s12 = scalar_lea.sflag (!%p2231_p1), [#allocation3], %s1962_s2  ;;  %s328_s11 = scalar_lea.vmem (!%p2231_p1), [#allocation2], %s1217_s19 }
  0xa4   : > { %1642 = dma.done.wait (%p1901_p11), %s325_s12, 128  }
  0xa5   : > { %1644 = vsyncadd (%p1901_p11), %s325_s12, 4294967168  ;;  %p2232_p12 = scmp.eq.s32.totalorder %s1776_s30, 0 }
  0xa7   : > { %1646 = dma.done.wait (%p2232_p12), [#allocation6], 32   ;;  %p2233_p0 = pmov %p2232_p12 }
  0xa9   : > { %1648 = vsyncadd (%p2233_p0), [#allocation6], 4294967264  ;;  %p2234_p5 = pmov %p2233_p0 }
  0xaa   : > { %p2235_p7 = pmov %p2233_p0 }
  0xab   : > { %1650 = dma.done.wait (%p2234_p5), [#allocation9], 272  }
  0xac   : > { %1652 = vsyncadd (%p2235_p7), [#allocation9], 4294967024  ;;  %vm389_vm0 = vcmask 261120   ;;  %v386_v0 = vld [vmem:[%s328_s11] sm:$0xff]  ;;  %v1387_v7 = vld [vmem:[#allocation8] sm:$0xff]   ;;  %v1692_v8 = vmov 0.0   ;;  %v501_v33 = vlaneseq }
  0xad   : > { %v390_v1 = vsel %vm389_vm0, %v386_v0, 0.0  ;;  %1254 = vmatprep.subr.bf16.mxu0 %v1692_v8  ;;  %vm1693_vm1 = vmmov 0   ;;  %v1388_v9 = vld [vmem:[#allocation8 + $0x8] sm:$0xff]   ;;  %v1225_v14 = vld [vmem:[#allocation5] ss:$0 sm:$0xff]  ;;  %s1694_s1 = smov 104  }
  0xae   : > { %391 = vadd.xlane.f32.xlu0 %v390_v1  ;;  %1258 = vmatprep.mubr.msk.bf16.mxu0 %vm1693_vm1, %v1692_v8  ;;  %v1226_v16 = vld [vmem:[#allocation7] ss:$0 sm:$0xff]  ;;  %v1227_v20 = vld [vmem:[#allocation10] ss:$0 sm:$0xff]  ;;  %s1695_s8 = smov 120   ;;  %s1696_s21 = smov 112  }
  0xaf   : > { %1255 = vmatpush3.bf16.msra.mxu0 %v1387_v7  ;;  %s1697_s20 = smov 96   ;;  %s1698_s14 = smov 64   ;;  %v1699_v31 = vmov 1983009808   ;;  %v1700_v35 = vmov 1934713408  }
  0xb0   : > { %1256 = vmatprep.subr.bf16.mxu0 %v1692_v8  ;;  %v499_v32 = vunpack.c.l.s4 %v1699_v31  ;;  %v531_v36 = vunpack.c.l.s4 %v1700_v35  ;;  %v502_v38 = vshrl.u32 %v501_v33, 7  ;;  %s2006_s13 = sshll.u32 %s1962_s2, 4  ;;  %s2013_s10 = sshll.u32 %s1675_s27, 8  ;;  %vm636_vm2 = vcmask 60416  }
  0xb1   : > { %s370_s18 = scalar_lea.vmem [#allocation11], %s2006_s13  ;;  %s2020_s12 = scalar_lea.hbm %s2211_s5, %s2013_s10 }
  0xb2   : > { %v500_v37 = vunpack.c.0.s8 %v499_v32  ;;  %v532_v41 = vunpack.c.0.s8 %v531_v36  ;;  %s985_s16 = sshll.u32 %s370_s18, 4  ;;  %s961_s27 = scalar_lea.sflag [#allocation4], %s1962_s2  ;;  %s2022_s16 = int_to_ptr.vmem [resolvable:$true] %s985_s16 }
  0xb3   : > { %1257 = vmatpush3.bf16.msra.mxu0 %v1388_v9  ;;  %s1533_s11 = scalar_lea.vmem %s2022_s16, 256  ;;  %p2236_p10 = scmp.ne.s32.totalorder %s2228_s22, 0 }
  0xb4   : > { %v1989_v42 = vsub.s32 %v500_v37, %v502_v38  ;;  %v1991_v48 = vsub.s32 %v532_v41, %v502_v38  ;;  %p1534_p11 = scmp.ne.s32.totalorder %s2022_s16, %s1533_s11 }
  0xb6   : > { %p1535_p13 = pnand %p1534_p11, %p2236_p10 }
  0xb8   : > { %p1536_p2 = pneg %p1535_p13 }
 0x13b   : > { %v392_v2 = vpop.xlane.xlu0 %391 }
 0x13c   : > { %v394_v3 = vmul.f32 0.03125, %v392_v2 }
 0x13e   : > { %v395_v4 = vsub.f32 %v386_v0, %v394_v3 }
 0x140   : > { %v396_v5 = vmul.f32 %v395_v4, %v395_v4 }
 0x142   : > { %v397_v6 = vsel %vm389_vm0, %v396_v5, 0.0 }
 0x143   : > { %398 = vadd.xlane.f32.xlu0 %v397_v6 }
 0x1d0   : > { %v399_v10 = vpop.xlane.xlu0 %398 }
 0x1d1   : > { %v400_v11 = vmul.f32 0.03125, %v399_v10 }
 0x1d3   : > { %v401_v12 = vadd.f32 1e-05, %v400_v11 }
 0x1d5   : > { %1389 = vrsqrt.f32 %v401_v12 }
 0x1df   : > { %v1390_v13 = vpop.eup %1389 }
 0x1e0   : > { %v403_v15 = vmul.f32 %v1390_v13, %v395_v4 }
 0x1e2   : > { %v410_v17 = vmul.f32 %v1225_v14, %v403_v15 }
 0x1e4   : > { %v417_v18 = vadd.f32 %v1226_v16, %v410_v17 }
 0x1e6   : > { %v418_v19 = vpack.c.bf16 %v417_v18, %v417_v18 }
 0x1e8   : > { %1259 = vmatmul.mubr.msk.bf16.vlgmr.msra.gmra.mrb[0].mxu0 %vm389_vm0, %v418_v19 }
 0x2bb   : > { %v479_v21 = vpop.f32.mrb[0].mxu0 }
 0x2bc   : > { %v480_v22 = vadd.f32 %v1227_v20, %v479_v21  ;;  %v1260_v23 = vpop.f32.mrb[1].mxu0 }
 0x2bd   : > { %v482_v24 = vpop.f32.mrb[2].mxu0 }
 0x2be   : > { %646 = vrot.lane.b32.xlu0 %v480_v22, %s1694_s1  ;;  %642 = vrot.lane.b32.xlu1 %v480_v22, %s1695_s8  ;;  %v1261_v25 = vpop.f32.mrb[3].mxu0  ;;  %v485_v26 = vmul.f32 0.35355338, %v480_v22 }
 0x2c2   : > { %644 = vrot.lane.b32.xlu1 %v480_v22, %s1696_s21  ;;  %493 = vrot.lane.b32.xlu0 %v485_v26, %s1694_s1  ;;  %s1701_s1 = smov [#allocation11]  }
 0x2c6   : > { %648 = vrot.lane.b32.xlu1 %v480_v22, %s1697_s20 }
 0x2ca   : > { %804 = vrot.lane.b32.xlu1 %v480_v22, %s1698_s14 }
 0x2ce   : > { %487 = vrot.lane.b32.xlu1 %v485_v26, %s1695_s8  ;;  %s1537_s8 = sshll.u32 %s1701_s1, 4  ;;  %s1538_s8 = int_to_ptr.vmem [resolvable:$false] %s1537_s8 }
 0x2cf   : > { %p1540_p8 = scmp.lt.s32.totalorder %s2022_s16, %s1538_s8 }
 0x2d2   : > { %490 = vrot.lane.b32.xlu1 %v485_v26, %s1696_s21  ;;  %s1539_s21 = scalar_lea.vmem %s1538_s8, 512 }
 0x2d3   : > { %p1541_p9 = scmp.lt.s32.totalorder %s1539_s21, %s1533_s11 }
 0x2d5   : > { %p1542_p4 = por %p1541_p9, %p1540_p8 }
 0x2d7   : > { %p1543_p6 = pnand %p1542_p4, %p1536_p2 }
 0x330   : > { %v643_v27 = vpop.permute.xlu1 %642  ;;  %v647_v28 = vpop.permute.xlu0 %646 }
 0x331   : > { %806 = vrot.lane.b32.xlu0 %v643_v27, %s1698_s14  ;;  %650 = vrot.lane.b32.xlu1 %v643_v27, %s1697_s20 }
 0x334   : > { %v645_v29 = vpop.permute.xlu1 %644  ;;  %v494_v40 = vpop.permute.xlu0 %493 }
 0x335   : > { %810 = vrot.lane.b32.xlu0 %v647_v28, %s1698_s14  ;;  %652 = vrot.lane.b32.xlu1 %v645_v29, %s1697_s20 }
 0x338   : > { %v1984_v30 = vpop.permute.xlu1 %648 }
 0x339   : > { %654 = vrot.lane.b32.xlu1 %v647_v28, %s1697_s20 }
 0x33c   : > { %v1986_v34 = vpop.permute.xlu1 %804 }
 0x33d   : > { %808 = vrot.lane.b32.xlu1 %v645_v29, %s1698_s14 }
 0x340   : > { %v488_v39 = vpop.permute.xlu1 %487 }
 0x341   : > { %v512_v43 = vcombine.low %v488_v39, %v494_v40  ;;  %v513_v44 = vcombine.high %v488_v39, %v494_v40 }
 0x343   : > { %v520_v49 = vrot.slane %v512_v43, %v1989_v42  ;;  %v527_v50 = vrot.slane %v513_v44, %v1989_v42 }
 0x344   : > { %v491_v45 = vpop.permute.xlu1 %490 }
 0x345   : > { %v496_v46 = vcombine.low %v485_v26, %v491_v45  ;;  %v497_v47 = vcombine.high %v485_v26, %v491_v45 }
 0x347   : > { %v504_v51 = vrot.slane %v496_v46, %v1989_v42  ;;  %v511_v52 = vrot.slane %v497_v47, %v1989_v42 }
 0x349   : > { %v528_v53 = vcombine.low %v504_v51, %v520_v49  ;;  %v529_v54 = vcombine.high %v504_v51, %v520_v49  ;;  %v544_v55 = vcombine.low %v511_v52, %v527_v50  ;;  %v545_v56 = vcombine.high %v511_v52, %v527_v50 }
 0x34b   : > { %v536_v57 = vrot.slane %v528_v53, %v1991_v48  ;;  %v543_v58 = vrot.slane %v529_v54, %v1991_v48  ;;  %v552_v59 = vrot.slane %v544_v55, %v1991_v48  ;;  %v559_v60 = vrot.slane %v545_v56, %v1991_v48 }
 0x34d   : > { %v564_v61 = vcombine.low %v536_v57, %v543_v58  ;;  %v1231_v62 = vcombine.high %v536_v57, %v543_v58  ;;  %v580_v63 = vcombine.low %v552_v59, %v559_v60  ;;  %v1232_v0 = vcombine.high %v552_v59, %v559_v60 }
 0x34f   : > { %v571_v1 = vrot.slane %v564_v61, %v1989_v42  ;;  %v579_v2 = vrot.slane %v1231_v62, %v1989_v42  ;;  %v587_v3 = vrot.slane %v580_v63, %v1989_v42  ;;  %v595_v4 = vrot.slane %v1232_v0, %v1989_v42 }
 0x351   : > { %v596_v5 = vcombine.low %v571_v1, %v579_v2  ;;  %v597_v6 = vcombine.high %v571_v1, %v579_v2  ;;  %v612_v7 = vcombine.low %v587_v3, %v595_v4  ;;  %v613_v8 = vcombine.high %v587_v3, %v595_v4 }
 0x353   : > { %v604_v9 = vrot.slane %v596_v5, %v1991_v48  ;;  %v611_v10 = vrot.slane %v597_v6, %v1991_v48  ;;  %v620_v11 = vrot.slane %v612_v7, %v1991_v48  ;;  %v627_v12 = vrot.slane %v613_v8, %v1991_v48 }
 0x355   : > { %v628_v13 = vcombine.low %v604_v9, %v620_v11  ;;  %v629_v14 = vcombine.high %v604_v9, %v620_v11  ;;  %v630_v15 = vcombine.low %v611_v10, %v627_v12  ;;  %v631_v16 = vcombine.high %v611_v10, %v627_v12 }
 0x357   : > { %v632_v17 = vpack.c.bf16 %v628_v13, %v628_v13  ;;  %v633_v18 = vpack.c.bf16 %v629_v14, %v629_v14  ;;  %v634_v19 = vpack.c.bf16 %v630_v15, %v630_v15  ;;  %v635_v20 = vpack.c.bf16 %v631_v16, %v631_v16 }
 0x359   : > { %637 = vst.msk [vmem:[%s370_s18] sm:$0xf] %vm636_vm2, %v632_v17  ;;  %638 = vst.msk [vmem:[%s370_s18 + $0x4] sm:$0xf] %vm636_vm2, %v633_v18 }
 0x35a   : > { %639 = vst.msk [vmem:[%s370_s18 + $0x8] sm:$0xf] %vm636_vm2, %v634_v19  ;;  %640 = vst.msk [vmem:[%s370_s18 + $0xc] sm:$0xf] %vm636_vm2, %v635_v20 }
 0x35b   : > { %1546 = shalt.err (!%p1543_p6)
}
 0x35c   : > { %s1547_s20 = scalar_lea.hbm %s2020_s12, 256  ;;  %s1551_s19 = scalar_lea.hbm %s2211_s5, 512 }
 0x35d   : > { %p1548_p3 = scmp.ne.s32.totalorder %s2020_s12, %s1547_s20  ;;  %p1552_p0 = scmp.lt.u32.totalorder %s2020_s12, %s2211_s5 }
 0x35e   : > { %p1553_p5 = scmp.lt.u32.totalorder %s1551_s19, %s1547_s20  ;;  %p1555_p11 = scmp.lt.u32.totalorder %s1547_s20, %s2020_s12 }
 0x35f   : > { %p1549_p1 = pnand %p1548_p3, %p2236_p10 }
 0x360   : > { %p1554_p7 = por %p1553_p5, %p1552_p0 }
 0x361   : > { %p1550_p12 = pneg %p1549_p1 }
 0x362   : > { %p1556_p13 = por %p1555_p11, %p1554_p7 }
 0x364   : > { %p1557_p2 = pnand %p1556_p13, %p1550_p12 }
 0x366   : > { %1560 = shalt.err (!%p1557_p2)
}
 0x367   : > { %s1702_s11 = smov 4   ;;  %s965_s2 = sand.u32 1, %s1776_s30  }
 0x368   : > { %1280 = dma.vmem_to_hbm [thread:$0]  (%p2236_p10), %s2022_s16, 256, %s2020_s12, %s961_s27, %s1698_s14, %s1698_s14, %s1702_s11  }
 0x369   : > { %s377_s16 = scalar_lea.vmem [#allocation12], %s2006_s13  ;;  %s2093_s20 = scalar_lea.hbm %s2212_s6, %s2013_s10 }
 0x36a   : > { %s1002_s12 = sshll.u32 %s377_s16, 4  ;;  %s2106_s18 = scalar_lea.vmem [#allocation14], %s2006_s13  ;;  %s2095_s12 = int_to_ptr.vmem [resolvable:$true] %s1002_s12 }
 0x36b   : > { %s1019_s15 = sshll.u32 %s2106_s18, 4  ;;  %s2111_s19 = scalar_lea.sflag [#allocation13], %s965_s2  ;;  %s2146_s15 = int_to_ptr.vmem [resolvable:$true] %s1019_s15 }
 0x36c   : > { %s1561_s1 = scalar_lea.vmem %s2095_s12, 256  ;;  %s1703_s8 = smov [#allocation12]  }
 0x36d   : > { %p1562_p8 = scmp.ne.s32.totalorder %s2095_s12, %s1561_s1  ;;  %s1565_s27 = sshll.u32 %s1703_s8, 4  ;;  %s1566_s27 = int_to_ptr.vmem [resolvable:$false] %s1565_s27 }
 0x36e   : > { %p1568_p6 = scmp.lt.s32.totalorder %s2095_s12, %s1566_s27 }
 0x36f   : > { %p1563_p9 = pnand %p1562_p8, %p2236_p10 }
 0x371   : > { %p1564_p4 = pneg %p1563_p9 }
 0x3a3   : > { %v651_v21 = vpop.permute.xlu1 %650  ;;  %v807_v22 = vpop.permute.xlu0 %806 }
 0x3a7   : > { %v653_v23 = vpop.permute.xlu1 %652  ;;  %v811_v27 = vpop.permute.xlu0 %810 }
 0x3a8   : > { %v660_v24 = vcombine.low %v1984_v30, %v653_v23  ;;  %v661_v25 = vcombine.high %v1984_v30, %v653_v23  ;;  %v832_v36 = vcombine.low %v807_v22, %v811_v27  ;;  %v833_v37 = vcombine.high %v807_v22, %v811_v27 }
 0x3aa   : > { %v668_v31 = vrot.slane %v660_v24, %v1989_v42  ;;  %v675_v32 = vrot.slane %v661_v25, %v1989_v42  ;;  %v840_v50 = vrot.slane %v832_v36, %v1989_v42  ;;  %v847_v51 = vrot.slane %v833_v37, %v1989_v42 }
 0x3ab   : > { %v655_v26 = vpop.permute.xlu1 %654 }
 0x3ac   : > { %v676_v28 = vcombine.low %v651_v21, %v655_v26  ;;  %v677_v29 = vcombine.high %v651_v21, %v655_v26 }
 0x3ae   : > { %v684_v33 = vrot.slane %v676_v28, %v1989_v42  ;;  %v691_v35 = vrot.slane %v677_v29, %v1989_v42 }
 0x3af   : > { %v809_v38 = vpop.permute.xlu1 %808 }
 0x3b0   : > { %v692_v39 = vcombine.low %v668_v31, %v684_v33  ;;  %v693_v40 = vcombine.high %v668_v31, %v684_v33  ;;  %v708_v41 = vcombine.low %v675_v32, %v691_v35  ;;  %v709_v43 = vcombine.high %v675_v32, %v691_v35 }
 0x3b1   : > { %v816_v30 = vcombine.low %v1986_v34, %v809_v38  ;;  %v817_v44 = vcombine.high %v1986_v34, %v809_v38 }
 0x3b2   : > { %v700_v45 = vrot.slane %v692_v39, %v1991_v48  ;;  %v707_v46 = vrot.slane %v693_v40, %v1991_v48  ;;  %v716_v47 = vrot.slane %v708_v41, %v1991_v48  ;;  %v723_v49 = vrot.slane %v709_v43, %v1991_v48 }
 0x3b3   : > { %v824_v52 = vrot.slane %v816_v30, %v1989_v42  ;;  %v831_v53 = vrot.slane %v817_v44, %v1989_v42 }
 0x3b4   : > { %v728_v54 = vcombine.low %v700_v45, %v707_v46  ;;  %v1233_v55 = vcombine.high %v700_v45, %v707_v46  ;;  %v744_v56 = vcombine.low %v716_v47, %v723_v49  ;;  %v1234_v34 = vcombine.high %v716_v47, %v723_v49 }
 0x3b5   : > { %v848_v57 = vcombine.low %v824_v52, %v840_v50  ;;  %v849_v58 = vcombine.high %v824_v52, %v840_v50  ;;  %v864_v59 = vcombine.low %v831_v53, %v847_v51  ;;  %v865_v60 = vcombine.high %v831_v53, %v847_v51 }
 0x3b6   : > { %v735_v61 = vrot.slane %v728_v54, %v1989_v42  ;;  %v743_v62 = vrot.slane %v1233_v55, %v1989_v42  ;;  %v751_v63 = vrot.slane %v744_v56, %v1989_v42  ;;  %v759_v0 = vrot.slane %v1234_v34, %v1989_v42 }
 0x3b7   : > { %v856_v1 = vrot.slane %v848_v57, %v1991_v48  ;;  %v863_v2 = vrot.slane %v849_v58, %v1991_v48  ;;  %v872_v3 = vrot.slane %v864_v59, %v1991_v48  ;;  %v879_v4 = vrot.slane %v865_v60, %v1991_v48 }
 0x3b8   : > { %v760_v5 = vcombine.low %v735_v61, %v743_v62  ;;  %v761_v6 = vcombine.high %v735_v61, %v743_v62  ;;  %v776_v7 = vcombine.low %v751_v63, %v759_v0  ;;  %v777_v8 = vcombine.high %v751_v63, %v759_v0 }
 0x3b9   : > { %v884_v9 = vcombine.low %v856_v1, %v863_v2  ;;  %v1235_v10 = vcombine.high %v856_v1, %v863_v2  ;;  %v900_v11 = vcombine.low %v872_v3, %v879_v4  ;;  %v1236_v12 = vcombine.high %v872_v3, %v879_v4 }
 0x3ba   : > { %v768_v13 = vrot.slane %v760_v5, %v1991_v48  ;;  %v775_v14 = vrot.slane %v761_v6, %v1991_v48  ;;  %v784_v15 = vrot.slane %v776_v7, %v1991_v48  ;;  %v791_v16 = vrot.slane %v777_v8, %v1991_v48 }
 0x3bb   : > { %v891_v17 = vrot.slane %v884_v9, %v1989_v42  ;;  %v899_v18 = vrot.slane %v1235_v10, %v1989_v42  ;;  %v907_v19 = vrot.slane %v900_v11, %v1989_v42  ;;  %v915_v20 = vrot.slane %v1236_v12, %v1989_v42 }
 0x3bc   : > { %v792_v21 = vcombine.low %v768_v13, %v784_v15  ;;  %v793_v22 = vcombine.high %v768_v13, %v784_v15  ;;  %v794_v23 = vcombine.low %v775_v14, %v791_v16  ;;  %v795_v24 = vcombine.high %v775_v14, %v791_v16 }
 0x3bd   : > { %v916_v25 = vcombine.low %v891_v17, %v899_v18  ;;  %v917_v26 = vcombine.high %v891_v17, %v899_v18  ;;  %v932_v27 = vcombine.low %v907_v19, %v915_v20  ;;  %v933_v28 = vcombine.high %v907_v19, %v915_v20 }
 0x3be   : > { %v796_v29 = vpack.c.bf16 %v792_v21, %v792_v21  ;;  %v797_v31 = vpack.c.bf16 %v793_v22, %v793_v22  ;;  %v798_v32 = vpack.c.bf16 %v794_v23, %v794_v23  ;;  %v799_v33 = vpack.c.bf16 %v795_v24, %v795_v24 }
 0x3bf   : > { %v924_v42 = vrot.slane %v916_v25, %v1991_v48  ;;  %v931_v35 = vrot.slane %v917_v26, %v1991_v48  ;;  %v940_v36 = vrot.slane %v932_v27, %v1991_v48  ;;  %v947_v37 = vrot.slane %v933_v28, %v1991_v48 }
 0x3c0   : > { %800 = vst.msk [vmem:[%s377_s16] sm:$0xf] %vm636_vm2, %v796_v29  ;;  %801 = vst.msk [vmem:[%s377_s16 + $0x4] sm:$0xf] %vm636_vm2, %v797_v31 }
 0x3c1   : > { %802 = vst.msk [vmem:[%s377_s16 + $0x8] sm:$0xf] %vm636_vm2, %v798_v32  ;;  %803 = vst.msk [vmem:[%s377_s16 + $0xc] sm:$0xf] %vm636_vm2, %v799_v33  ;;  %v948_v38 = vcombine.low %v924_v42, %v940_v36  ;;  %v949_v39 = vcombine.high %v924_v42, %v940_v36  ;;  %v950_v40 = vcombine.low %v931_v35, %v947_v37  ;;  %s1567_s16 = scalar_lea.vmem %s1566_s27, 512 }
 0x3c2   : > { %v951_v41 = vcombine.high %v931_v35, %v947_v37  ;;  %p1569_p3 = scmp.lt.s32.totalorder %s1567_s16, %s1561_s1 }
 0x3c4   : > { %p1570_p1 = por %p1569_p3, %p1568_p6 }
 0x3c6   : > { %p1571_p12 = pnand %p1570_p1, %p1564_p4 }
 0x3c8   : > { %1574 = shalt.err (!%p1571_p12)
}
 0x3c9   : > { %s1575_s30 = scalar_lea.hbm %s2093_s20, 256  ;;  %s1579_s21 = scalar_lea.hbm %s2212_s6, 512 }
 0x3ca   : > { %p1576_p0 = scmp.ne.s32.totalorder %s2093_s20, %s1575_s30  ;;  %p1580_p11 = scmp.lt.u32.totalorder %s2093_s20, %s2212_s6 }
 0x3cb   : > { %p1581_p13 = scmp.lt.u32.totalorder %s1579_s21, %s1575_s30  ;;  %p1583_p8 = scmp.lt.u32.totalorder %s1575_s30, %s2093_s20 }
 0x3cc   : > { %p1577_p5 = pnand %p1576_p0, %p2236_p10 }
 0x3cd   : > { %p1582_p2 = por %p1581_p13, %p1580_p11 }
 0x3ce   : > { %p1578_p7 = pneg %p1577_p5 }
 0x3cf   : > { %p1584_p9 = por %p1583_p8, %p1582_p2 }
 0x3d1   : > { %p1585_p4 = pnand %p1584_p9, %p1578_p7 }
 0x3d3   : > { %1588 = shalt.err (!%p1585_p4)
}
 0x3d4   : > { %1281 = dma.vmem_to_hbm [thread:$0]  (%p2236_p10), %s2095_s12, 256, %s2093_s20, %s2111_s19, %s1698_s14, %s1698_s14, %s1702_s11   ;;  %v952_v48 = vpack.c.bf16 %v948_v38, %v948_v38  ;;  %v953_v43 = vpack.c.bf16 %v949_v39, %v949_v39  ;;  %v954_v30 = vpack.c.bf16 %v950_v40, %v950_v40  ;;  %v955_v44 = vpack.c.bf16 %v951_v41, %v951_v41 }
 0x3d5   : > { %s2142_s30 = scalar_lea.hbm %s2213_s7, %s2013_s10  ;;  %s1589_s12 = scalar_lea.vmem %s2146_s15, 256 }
 0x3d6   : > { %956 = vst.msk [vmem:[%s2106_s18] sm:$0xf] %vm636_vm2, %v952_v48  ;;  %957 = vst.msk [vmem:[%s2106_s18 + $0x4] sm:$0xf] %vm636_vm2, %v953_v43  ;;  %p1590_p6 = scmp.ne.s32.totalorder %s2146_s15, %s1589_s12  ;;  %s1704_s10 = smov [#allocation14]  }
 0x3d7   : > { %958 = vst.msk [vmem:[%s2106_s18 + $0x8] sm:$0xf] %vm636_vm2, %v954_v30  ;;  %959 = vst.msk [vmem:[%s2106_s18 + $0xc] sm:$0xf] %vm636_vm2, %v955_v44  ;;  %s1593_s20 = sshll.u32 %s1704_s10, 4  ;;  %s1594_s20 = int_to_ptr.vmem [resolvable:$false] %s1593_s20 }
 0x3d8   : > { %p1591_p3 = pnand %p1590_p6, %p2236_p10  ;;  %s1595_s13 = scalar_lea.vmem %s1594_s20, 512 }
 0x3d9   : > { %p1596_p12 = scmp.lt.s32.totalorder %s2146_s15, %s1594_s20  ;;  %p1597_p0 = scmp.lt.s32.totalorder %s1595_s13, %s1589_s12 }
 0x3da   : > { %p1592_p1 = pneg %p1591_p3 }
 0x3db   : > { %p1598_p5 = por %p1597_p0, %p1596_p12 }
 0x3dd   : > { %p1599_p7 = pnand %p1598_p5, %p1592_p1 }
 0x3df   : > { %1602 = shalt.err (!%p1599_p7)
}
 0x3e0   : > { %s1603_s18 = scalar_lea.hbm %s2142_s30, 256  ;;  %s1607_s8 = scalar_lea.hbm %s2213_s7, 512 }
 0x3e1   : > { %p1604_p11 = scmp.ne.s32.totalorder %s2142_s30, %s1603_s18  ;;  %p1608_p8 = scmp.lt.u32.totalorder %s2142_s30, %s2213_s7 }
 0x3e2   : > { %p1609_p9 = scmp.lt.u32.totalorder %s1607_s8, %s1603_s18  ;;  %p1611_p6 = scmp.lt.u32.totalorder %s1603_s18, %s2142_s30 }
 0x3e3   : > { %p1605_p13 = pnand %p1604_p11, %p2236_p10 }
 0x3e4   : > { %p1610_p4 = por %p1609_p9, %p1608_p8 }
 0x3e5   : > { %p1606_p2 = pneg %p1605_p13 }
 0x3e6   : > { %p1612_p3 = por %p1611_p6, %p1610_p4 }
 0x3e8   : > { %p1613_p1 = pnand %p1612_p3, %p1606_p2 }
 0x3ea   : > { %1616 = shalt.err (!%p1613_p1)
}
 0x3eb   : > { %1282 = dma.vmem_to_hbm [thread:$0]  (%p2236_p10), %s2146_s15, 256, %s2142_s30, %s2111_s19, %s1698_s14, %s1698_s14, %s1702_s11  }
 0x3ec PF: > { %s1034_s16 = sand.u32 1, %s1663_s24   ;;  %p2237_p12 = scmp.ne.s32.totalorder %s2229_s9, 0 }
 0x3ed   : > { %p2238_p0 = scmp.ge.s32.totalorder %s1683_s29, 2  ;;  %s1035_s12 = scalar_lea.sflag [#allocation4], %s1034_s16 }
 0x3ef   : > { %p1304_p5 = pnand %p2238_p0, %p2237_p12 }
 0x3f1   : > { %1654 = dma.done.wait (!%p1304_p5), %s1035_s12, 256  }
 0x3f2   : > { %1656 = vsyncadd (!%p1304_p5), %s1035_s12, 4294967040  ;;  %s2239_s22 = sadd.s32 4294967294, %s1683_s29  }
 0x3f3   : > { %s1043_s10 = sand.u32 1, %s2239_s22  }
 0x3f4   : > { %s1044_s20 = scalar_lea.sflag [#allocation13], %s1043_s10 }
 0x3f5   : > { %1658 = dma.done.wait (!%p1304_p5), %s1044_s20, 512  }
 0x3f6   : > { %1660 = vsyncadd (!%p1304_p5), %s1044_s20, 4294966784  ;;  %s29_s29 = sadd.s32 1, %s1683_s29   ;;  %s2240_s24 = smov %s1667_s25 }
 0x3f7   : > { %p26_p10 = scmp.ge.s32.totalorder %s29_s29, 4   ;;  %s2241_s25 = smov %s1671_s26 }
 0x3f8   : > { %s2242_s26 = smov %s1912_s23  ;;  %s2243_s27 = smov %s1679_s28 }
 0x3f9   : > { %s2244_s28 = smov %s2246_s17  ;;  %28 = sbr.rel (!%p26_p10) target bundleno = 13 (0xd), region = 133 }
 0x400   :  { %1058 = vsyncpa [#allocation3], 1 }
 0x401   :  { %1060 = vsyncpa [#allocation3 + $0x1], 1 }
 0x402   :  { %1061 = vsyncpa [#allocation6], 1 }
 0x403   :  { %1062 = vsyncpa [#allocation9], 1 }
 0x404   :  { %1063 = vsyncpa [#allocation4], 1 }
 0x405   :  { %1065 = vsyncpa [#allocation4 + $0x1], 1 }
 0x406   :  { %1066 = vsyncpa [#allocation13], 1 }
 0x407   :  { %1068 = vsyncpa [#allocation13 + $0x1], 1 }

// kernel: tpu_custom_call.1
= control target key start
LH: loop header
LB: loop body
LE: loop exit
PB: predicated region body
PF: predicated region fallthrough
CT: control target
= control target key end

     0   :  { %s2206_s0 = inlined_call_operand.hbm [shape: f32[2,8,32], index: 0, kind: input, shape index: {}]   ;;  %s2207_s1 = inlined_call_operand.hbm [shape: f32[1,32], index: 1, kind: input, shape index: {}]   ;;  %s2208_s2 = inlined_call_operand.hbm [shape: f32[1,32], index: 2, kind: input, shape index: {}]   ;;  %s2209_s3 = inlined_call_operand.hbm [shape: bf16[32,96], index: 3, kind: input, shape index: {}]   ;;  %s2210_s4 = inlined_call_operand.hbm [shape: f32[1,96], index: 4, kind: input, shape index: {}]   ;;  %s2211_s5 = inlined_call_operand.hbm [shape: bf16[2,4,8,8], index: 5, kind: output, shape index: {0}]   ;;  %s2212_s6 = inlined_call_operand.hbm [shape: bf16[2,4,8,8], index: 6, kind: output, shape index: {1}]   ;;  %s2213_s7 = inlined_call_operand.hbm [shape: bf16[2,4,8,8], index: 7, kind: output, shape index: {2}]  }
   0x1   :  { %2218 = sst [smem:[#allocation20_spill]] %s2207_s1 }
   0x2   :  { %2219 = sst [smem:[#allocation21_spill]] %s2208_s2 }
   0x3   :  { %13 = vsyncpa [#allocation3], 0 }
   0x4   :  { %15 = vsyncpa [#allocation3 + $0x1], 0 }
   0x5   :  { %16 = vsyncpa [#allocation6], 0 }
   0x6   :  { %17 = vsyncpa [#allocation9], 0 }
   0x7   :  { %18 = vsyncpa [#allocation4], 0 }
   0x8   :  { %20 = vsyncpa [#allocation4 + $0x1], 0 }
   0x9   :  { %21 = vsyncpa [#allocation13], 0 }
   0xa   :  { %23 = vsyncpa [#allocation13 + $0x1], 0  ;;  %s1745_s24 = smov 0   ;;  %s1747_s25 = smov 0  }
   0xb   :  { %s1749_s26 = smov 0   ;;  %s1751_s27 = smov 0  }
   0xc   :  { %s1753_s28 = smov 0   ;;  %s1755_s29 = smov 0  }
   0xd LB: > { %s1776_s30 = sadd.s32 4294967295, %s1683_s29   ;;  %p1208_p0 = scmp.ge.s32.totalorder %s1683_s29, 1  ;;  %s1683_s29 = sphi %s1755_s29, %s29_s29   ;;  %s1679_s28 = sphi %s1753_s28, %s2244_s28   ;;  %s1675_s27 = sphi %s1751_s27, %s2243_s27   ;;  %s1671_s26 = sphi %s1749_s26, %s2242_s26   ;;  %s1667_s25 = sphi %s1747_s25, %s2241_s25   ;;  %s1663_s24 = sphi %s1745_s24, %s2240_s24  }
   0xe   : > { %p2214_p1 = scmp.eq.s32.totalorder %s1776_s30, 0  ;;  %p242_p2 = scmp.lt.s32.totalorder %s1683_s29, 3 }
   0xf   : > { %s1685_s9 = smov [#allocation5]   ;;  %s1686_s11 = smov [#allocation8]  }
  0x10   : > { %p1781_p3 = pnand %p1208_p0, %p242_p2  ;;  %s255_s10 = sshll.u32 %s1685_s9, 4  ;;  %s256_s10 = int_to_ptr.vmem [resolvable:$true] %s255_s10 }
  0x11   : > { %s276_s12 = sshll.u32 %s1686_s11, 4  ;;  %s1687_s14 = smov [#allocation7]   ;;  %s1794_s12 = int_to_ptr.vmem [resolvable:$true] %s276_s12 }
  0x12   : > { %s2220_s8 = scalar_select %p1781_p3, 1, 0 }
  0x13   : > { %p1286_p5 = pneg %p1781_p3  ;;  %s1796_s15 = sshll.u32 %s1687_s14, 4  ;;  %s267_s15 = int_to_ptr.vmem [resolvable:$true] %s1796_s15 }
  0x14   : > { %s2222_s1 = sld [smem:[#allocation20_spill]] }
  0x15   : > { %p1790_p6 = pnand %p1286_p5, %p2214_p1 }
  0x17   : > { %p1806_p8 = pneg %p1790_p6 }
  0x1a   : > { %s1391_s18 = scalar_lea.hbm %s2222_s1, 16 }
  0x1b   : > { %p1392_p7 = scmp.ne.s32.totalorder %s2222_s1, %s1391_s18  ;;  %p1398_p11 = scmp.lt.u32.totalorder %s1391_s18, %s2222_s1 }
  0x1d   : > { %p1394_p9 = pnand %p1806_p8, %p1392_p7 }
  0x1f   : > { %p1395_p10 = pneg %p1394_p9 }
  0x21   : > { %p1400_p12 = pnand %p1398_p11, %p1395_p10 }
  0x23   : > { %1403 = shalt.err (!%p1400_p12)
}
  0x24   : > { %s1404_s9 = scalar_lea.vmem %s256_s10, 16  ;;  %s1411_s11 = scalar_lea.vmem %s256_s10, 32 }
  0x25   : > { %p1405_p13 = scmp.ne.s32.totalorder %s256_s10, %s1404_s9  ;;  %p1412_p5 = scmp.lt.s32.totalorder %s256_s10, %s256_s10 }
  0x26   : > { %p1413_p4 = scmp.lt.s32.totalorder %s1411_s11, %s1404_s9 }
  0x27   : > { %p1407_p0 = pnand %p1405_p13, %p1806_p8 }
  0x28   : > { %p1414_p1 = por %p1413_p4, %p1412_p5 }
  0x29   : > { %p1408_p2 = pneg %p1407_p0 }
  0x2b   : > { %p1415_p3 = pnand %p1414_p1, %p1408_p2 }
  0x2d   : > { %1418 = shalt.err (!%p1415_p3)
}
  0x2e   : > { %1289 = dma.hbm_to_vmem [thread:$0]  (!%p1790_p6), %s2222_s1, 16, %s256_s10, [#allocation6]  }
  0x2f   : > { %s1419_s19 = scalar_lea.hbm %s2209_s3, 256 }
  0x30   : > { %p1420_p7 = scmp.ne.s32.totalorder %s2209_s3, %s1419_s19  ;;  %p1426_p1 = scmp.lt.u32.totalorder %s1419_s19, %s2209_s3 }
  0x32   : > { %p1422_p9 = pnand %p1420_p7, %p1806_p8 }
  0x34   : > { %p1423_p4 = pneg %p1422_p9 }
  0x36   : > { %p1428_p3 = pnand %p1426_p1, %p1423_p4 }
  0x38   : > { %1431 = shalt.err (!%p1428_p3)
}
  0x39   : > { %s1432_s10 = scalar_lea.vmem %s1794_s12, 256  ;;  %p1440_p13 = scmp.lt.s32.totalorder %s1794_s12, %s1794_s12 }
  0x3a   : > { %p1433_p10 = scmp.ne.s32.totalorder %s1794_s12, %s1432_s10  ;;  %p1441_p0 = scmp.lt.s32.totalorder %s1432_s10, %s1432_s10 }
  0x3c   : > { %p1435_p11 = pnand %p1433_p10, %p1806_p8  ;;  %p1442_p2 = por %p1441_p0, %p1440_p13 }
  0x3e   : > { %p1436_p12 = pneg %p1435_p11 }
  0x40   : > { %p1443_p5 = pnand %p1442_p2, %p1436_p12 }
  0x42   : > { %1446 = shalt.err (!%p1443_p5)
}
  0x43   : > { %s1688_s11 = smov 64   ;;  %s1689_s14 = smov 4  }
  0x44   : > { %1295 = dma.hbm_to_vmem [thread:$0]  (!%p1790_p6), %s2209_s3, 256, %s1794_s12, [#allocation9], %s1688_s11, %s1688_s11, %s1689_s14  }
  0x45   : > { %s2224_s2 = sld [smem:[#allocation21_spill]] }
  0x4b   : > { %s1447_s20 = scalar_lea.hbm %s2224_s2, 16 }
  0x4c   : > { %p1448_p7 = scmp.ne.s32.totalorder %s2224_s2, %s1447_s20  ;;  %p1454_p1 = scmp.lt.u32.totalorder %s1447_s20, %s2224_s2 }
  0x4e   : > { %p1450_p9 = pnand %p1448_p7, %p1806_p8 }
  0x50   : > { %p1451_p4 = pneg %p1450_p9 }
  0x52   : > { %p1456_p3 = pnand %p1454_p1, %p1451_p4 }
  0x54   : > { %1459 = shalt.err (!%p1456_p3)
}
  0x55   : > { %s1460_s16 = scalar_lea.vmem %s267_s15, 16  ;;  %s1467_s12 = scalar_lea.vmem %s267_s15, 32 }
  0x56   : > { %p1461_p10 = scmp.ne.s32.totalorder %s267_s15, %s1460_s16  ;;  %p1468_p13 = scmp.lt.s32.totalorder %s267_s15, %s267_s15 }
  0x57   : > { %p1469_p0 = scmp.lt.s32.totalorder %s1467_s12, %s1460_s16 }
  0x58   : > { %p1463_p11 = pnand %p1461_p10, %p1806_p8 }
  0x59   : > { %p1470_p2 = por %p1469_p0, %p1468_p13 }
  0x5a   : > { %p1464_p12 = pneg %p1463_p11 }
  0x5c   : > { %p1471_p5 = pnand %p1470_p2, %p1464_p12 }
  0x5e   : > { %1474 = shalt.err (!%p1471_p5)
}
  0x5f   : > { %1292 = dma.hbm_to_vmem [thread:$0]  (!%p1790_p6), %s2224_s2, 16, %s267_s15, [#allocation6]  }
  0x60   : > { %s1690_s17 = smov [#allocation10]   ;;  %s1475_s22 = scalar_lea.hbm %s2210_s4, 16 }
  0x61   : > { %s290_s18 = sshll.u32 %s1690_s17, 4  ;;  %p1476_p7 = scmp.ne.s32.totalorder %s2210_s4, %s1475_s22  ;;  %s291_s18 = int_to_ptr.vmem [resolvable:$true] %s290_s18 }
  0x62   : > { %p1482_p1 = scmp.lt.u32.totalorder %s1475_s22, %s2210_s4 }
  0x63   : > { %p1478_p9 = pnand %p1476_p7, %p1806_p8 }
  0x65   : > { %p1479_p4 = pneg %p1478_p9 }
  0x67   : > { %p1484_p3 = pnand %p1482_p1, %p1479_p4 }
  0x69   : > { %1487 = shalt.err (!%p1484_p3)
}
  0x6a   : > { %s1488_s15 = scalar_lea.vmem %s291_s18, 16  ;;  %s1495_s12 = scalar_lea.vmem %s291_s18, 32 }
  0x6b   : > { %p1489_p10 = scmp.ne.s32.totalorder %s291_s18, %s1488_s15  ;;  %p1496_p13 = scmp.lt.s32.totalorder %s291_s18, %s291_s18 }
  0x6c   : > { %p1497_p0 = scmp.lt.s32.totalorder %s1495_s12, %s1488_s15 }
  0x6d   : > { %p1491_p11 = pnand %p1489_p10, %p1806_p8 }
  0x6e   : > { %p1498_p2 = por %p1497_p0, %p1496_p13 }
  0x6f   : > { %p1492_p12 = pneg %p1491_p11 }
  0x71   : > { %p1499_p5 = pnand %p1498_p2, %p1492_p12 }
  0x73   : > { %1502 = shalt.err (!%p1499_p5)
}
  0x74   : > { %1298 = dma.hbm_to_vmem [thread:$0]  (!%p1790_p6), %s2210_s4, 16, %s291_s18, [#allocation9]  }
  0x75   : > { %s2216_s21 = sadd.s32 4294967294, %s1683_s29   ;;  %s41_s17 = sadd.s32 1, %s1679_s28 }
  0x76   : > { %p43_p8 = scmp.ge.s32.totalorder %s41_s17, 2  ;;  %s50_s13 = sadd.s32 1, %s1671_s26 }
  0x77   : > { %p57_p7 = scmp.ne.s32.totalorder %s1671_s26, %s1667_s25  ;;  %p58_p9 = scmp.eq.s32.totalorder %s1683_s29, 0 }
  0x78   : > { %s2246_s17 = smov (%p43_p8, %s41_s17), 0  ;;  %p63_p1 = scmp.ne.s32.totalorder %s1667_s25, %s1663_s24 }
  0x79   : > { %p1890_p4 = por %p58_p9, %p57_p7  ;;  %s45_s18 = ssub.s32 %s1679_s28, %s2246_s17 }
  0x7a   : > { %p173_p6 = scmp.eq.s32.totalorder %s1776_s30, 1  ;;  %p48_p3 = scmp.eq.s32.totalorder %s45_s18, 0 }
  0x7b   : > { %p2226_p10 = scmp.eq.s32.totalorder %s1776_s30, 0  ;;  %p179_p13 = scmp.eq.s32.totalorder %s2216_s21, 1 }
  0x7c   : > { %p1905_p12 = por %p173_p6, %p57_p7  ;;  %p1317_p2 = scmp.lt.s32.totalorder %s1683_s29, 2 }
  0x7d   : > { %p1901_p11 = por %p2226_p10, %p63_p1  ;;  %p1914_p0 = por %p179_p13, %p63_p1 }
  0x7e   : > { %s2228_s22 = scalar_select %p1905_p12, 1, 0 }
  0x7f   : > { %s1912_s23 = scalar_select %p48_p3, %s1671_s26, %s50_s13  }
  0x80   : > { %s2229_s9 = scalar_select %p1914_p0, 1, 0 }
  0x81   : > { %s301_s10 = sand.u32 1, %s1671_s26   ;;  %s1215_s16 = sshll.u32 %s1679_s28, 7 }
  0x82   : > { %s1214_s15 = sshll.u32 %s301_s10, 3  ;;  %s1924_s14 = scalar_lea.hbm %s2206_s0, %s1215_s16 }
  0x83   : > { %s305_s18 = scalar_lea.vmem [#allocation2], %s1214_s15  ;;  %p1928_p5 = pnand %p1317_p2, %p1890_p4 }
  0x84   : > { %s313_s13 = sshll.u32 %s305_s18, 4  ;;  %s302_s1 = scalar_lea.sflag [#allocation3], %s301_s10  ;;  %s1932_s13 = int_to_ptr.vmem [resolvable:$true] %s313_s13 }
  0x85   : > { %s1503_s2 = scalar_lea.hbm %s1924_s14, 128  ;;  %p1505_p7 = pneg %p1928_p5 }
  0x86   : > { %p1504_p8 = scmp.ne.s32.totalorder %s1924_s14, %s1503_s2  ;;  %s1508_s19 = scalar_lea.hbm %s2206_s0, 256 }
  0x87   : > { %p1509_p4 = scmp.lt.u32.totalorder %s1924_s14, %s2206_s0  ;;  %p1510_p6 = scmp.lt.u32.totalorder %s1508_s19, %s1503_s2 }
  0x88   : > { %p1506_p9 = pnand %p1505_p7, %p1504_p8  ;;  %p1512_p10 = scmp.lt.u32.totalorder %s1503_s2, %s1924_s14 }
  0x89   : > { %p1511_p3 = por %p1510_p6, %p1509_p4 }
  0x8a   : > { %p1507_p1 = pneg %p1506_p9 }
  0x8b   : > { %p1513_p13 = por %p1512_p10, %p1511_p3 }
  0x8d   : > { %p1514_p2 = pnand %p1513_p13, %p1507_p1 }
  0x8f   : > { %1517 = shalt.err (!%p1514_p2)
}
  0x90   : > { %s1518_s10 = scalar_lea.vmem %s1932_s13, 128  ;;  %s1691_s18 = smov [#allocation2]  }
  0x91   : > { %p1519_p8 = scmp.ne.s32.totalorder %s1932_s13, %s1518_s10  ;;  %s1523_s16 = sshll.u32 %s1691_s18, 4  ;;  %s1524_s16 = int_to_ptr.vmem [resolvable:$false] %s1523_s16 }
  0x92   : > { %s1525_s15 = scalar_lea.vmem %s1524_s16, 256  ;;  %p1526_p12 = scmp.lt.s32.totalorder %s1932_s13, %s1524_s16 }
  0x93   : > { %p1521_p9 = pnand %p1519_p8, %p1505_p7  ;;  %p1527_p4 = scmp.lt.s32.totalorder %s1525_s15, %s1518_s10 }
  0x95   : > { %p1522_p0 = pneg %p1521_p9  ;;  %p1528_p6 = por %p1527_p4, %p1526_p12 }
  0x97   : > { %p1529_p3 = pnand %p1528_p6, %p1522_p0 }
  0x99   : > { %1532 = shalt.err (!%p1529_p3)
}
  0x9a   : > { %1302 = dma.hbm_to_vmem [thread:$0]  (!%p1928_p5), %s1924_s14, 128, %s1932_s13, %s302_s1  }
  0x9b   : > { %p2231_p1 = scmp.ne.s32.totalorder %s2220_s8, 0 }
  0x9c   : > { %s1962_s2 = sand.u32 (!%p2231_p1), 1, %s1667_s25  }
  0x9d   : > { %322 = sbr.rel (%p2231_p1) target bundleno = 1004 (0x3ec), region = 40  ;;  %s1217_s19 = sshll.u32 (!%p2231_p1), %s1962_s2, 3 }
  0x9e   : > { %s325_s12 = scalar_lea.sflag (!%p2231_p1), [#allocation3], %s1962_s2  ;;  %s328_s11 = scalar_lea.vmem (!%p2231_p1), [#allocation2], %s1217_s19 }
  0xa4   : > { %1642 = dma.done.wait (%p1901_p11), %s325_s12, 128  }
  0xa5   : > { %1644 = vsyncadd (%p1901_p11), %s325_s12, 4294967168  ;;  %p2232_p12 = scmp.eq.s32.totalorder %s1776_s30, 0 }
  0xa7   : > { %1646 = dma.done.wait (%p2232_p12), [#allocation6], 32   ;;  %p2233_p0 = pmov %p2232_p12 }
  0xa9   : > { %1648 = vsyncadd (%p2233_p0), [#allocation6], 4294967264  ;;  %p2234_p5 = pmov %p2233_p0 }
  0xaa   : > { %p2235_p7 = pmov %p2233_p0 }
  0xab   : > { %1650 = dma.done.wait (%p2234_p5), [#allocation9], 272  }
  0xac   : > { %1652 = vsyncadd (%p2235_p7), [#allocation9], 4294967024  ;;  %vm389_vm0 = vcmask 261120   ;;  %v386_v0 = vld [vmem:[%s328_s11] sm:$0xff]  ;;  %v1387_v7 = vld [vmem:[#allocation8] sm:$0xff]   ;;  %v1692_v8 = vmov 0.0   ;;  %v501_v33 = vlaneseq }
  0xad   : > { %v390_v1 = vsel %vm389_vm0, %v386_v0, 0.0  ;;  %1254 = vmatprep.subr.bf16.mxu0 %v1692_v8  ;;  %vm1693_vm1 = vmmov 0   ;;  %v1388_v9 = vld [vmem:[#allocation8 + $0x8] sm:$0xff]   ;;  %v1225_v14 = vld [vmem:[#allocation5] ss:$0 sm:$0xff]  ;;  %s1694_s1 = smov 104  }
  0xae   : > { %391 = vadd.xlane.f32.xlu0 %v390_v1  ;;  %1258 = vmatprep.mubr.msk.bf16.mxu0 %vm1693_vm1, %v1692_v8  ;;  %v1226_v16 = vld [vmem:[#allocation7] ss:$0 sm:$0xff]  ;;  %v1227_v20 = vld [vmem:[#allocation10] ss:$0 sm:$0xff]  ;;  %s1695_s8 = smov 120   ;;  %s1696_s21 = smov 112  }
  0xaf   : > { %1255 = vmatpush3.bf16.msra.mxu0 %v1387_v7  ;;  %s1697_s20 = smov 96   ;;  %s1698_s14 = smov 64   ;;  %v1699_v31 = vmov 1983009808   ;;  %v1700_v35 = vmov 1934713408  }
  0xb0   : > { %1256 = vmatprep.subr.bf16.mxu0 %v1692_v8  ;;  %v499_v32 = vunpack.c.l.s4 %v1699_v31  ;;  %v531_v36 = vunpack.c.l.s4 %v1700_v35  ;;  %v502_v38 = vshrl.u32 %v501_v33, 7  ;;  %s2006_s13 = sshll.u32 %s1962_s2, 4  ;;  %s2013_s10 = sshll.u32 %s1675_s27, 8  ;;  %vm636_vm2 = vcmask 60416  }
  0xb1   : > { %s370_s18 = scalar_lea.vmem [#allocation11], %s2006_s13  ;;  %s2020_s12 = scalar_lea.hbm %s2211_s5, %s2013_s10 }
  0xb2   : > { %v500_v37 = vunpack.c.0.s8 %v499_v32  ;;  %v532_v41 = vunpack.c.0.s8 %v531_v36  ;;  %s985_s16 = sshll.u32 %s370_s18, 4  ;;  %s961_s27 = scalar_lea.sflag [#allocation4], %s1962_s2  ;;  %s2022_s16 = int_to_ptr.vmem [resolvable:$true] %s985_s16 }
  0xb3   : > { %1257 = vmatpush3.bf16.msra.mxu0 %v1388_v9  ;;  %s1533_s11 = scalar_lea.vmem %s2022_s16, 256  ;;  %p2236_p10 = scmp.ne.s32.totalorder %s2228_s22, 0 }
  0xb4   : > { %v1989_v42 = vsub.s32 %v500_v37, %v502_v38  ;;  %v1991_v48 = vsub.s32 %v532_v41, %v502_v38  ;;  %p1534_p11 = scmp.ne.s32.totalorder %s2022_s16, %s1533_s11 }
  0xb6   : > { %p1535_p13 = pnand %p1534_p11, %p2236_p10 }
  0xb8   : > { %p1536_p2 = pneg %p1535_p13 }
 0x13b   : > { %v392_v2 = vpop.xlane.xlu0 %391 }
 0x13c   : > { %v394_v3 = vmul.f32 0.03125, %v392_v2 }
 0x13e   : > { %v395_v4 = vsub.f32 %v386_v0, %v394_v3 }
 0x140   : > { %v396_v5 = vmul.f32 %v395_v4, %v395_v4 }
 0x142   : > { %v397_v6 = vsel %vm389_vm0, %v396_v5, 0.0 }
 0x143   : > { %398 = vadd.xlane.f32.xlu0 %v397_v6 }
 0x1d0   : > { %v399_v10 = vpop.xlane.xlu0 %398 }
 0x1d1   : > { %v400_v11 = vmul.f32 0.03125, %v399_v10 }
 0x1d3   : > { %v401_v12 = vadd.f32 1e-05, %v400_v11 }
 0x1d5   : > { %1389 = vrsqrt.f32 %v401_v12 }
 0x1df   : > { %v1390_v13 = vpop.eup %1389 }
 0x1e0   : > { %v403_v15 = vmul.f32 %v1390_v13, %v395_v4 }
 0x1e2   : > { %v410_v17 = vmul.f32 %v1225_v14, %v403_v15 }
 0x1e4   : > { %v417_v18 = vadd.f32 %v1226_v16, %v410_v17 }
 0x1e6   : > { %v418_v19 = vpack.c.bf16 %v417_v18, %v417_v18 }
 0x1e8   : > { %1259 = vmatmul.mubr.msk.bf16.vlgmr.msra.gmra.mrb[0].mxu0 %vm389_vm0, %v418_v19 }
 0x2bb   : > { %v479_v21 = vpop.f32.mrb[0].mxu0 }
 0x2bc   : > { %v480_v22 = vadd.f32 %v1227_v20, %v479_v21  ;;  %v1260_v23 = vpop.f32.mrb[1].mxu0 }
 0x2bd   : > { %v482_v24 = vpop.f32.mrb[2].mxu0 }
 0x2be   : > { %646 = vrot.lane.b32.xlu0 %v480_v22, %s1694_s1  ;;  %642 = vrot.lane.b32.xlu1 %v480_v22, %s1695_s8  ;;  %v1261_v25 = vpop.f32.mrb[3].mxu0  ;;  %v485_v26 = vmul.f32 0.35355338, %v480_v22 }
 0x2c2   : > { %644 = vrot.lane.b32.xlu1 %v480_v22, %s1696_s21  ;;  %493 = vrot.lane.b32.xlu0 %v485_v26, %s1694_s1  ;;  %s1701_s1 = smov [#allocation11]  }
 0x2c6   : > { %648 = vrot.lane.b32.xlu1 %v480_v22, %s1697_s20 }
 0x2ca   : > { %804 = vrot.lane.b32.xlu1 %v480_v22, %s1698_s14 }
 0x2ce   : > { %487 = vrot.lane.b32.xlu1 %v485_v26, %s1695_s8  ;;  %s1537_s8 = sshll.u32 %s1701_s1, 4  ;;  %s1538_s8 = int_to_ptr.vmem [resolvable:$false] %s1537_s8 }
 0x2cf   : > { %p1540_p8 = scmp.lt.s32.totalorder %s2022_s16, %s1538_s8 }
 0x2d2   : > { %490 = vrot.lane.b32.xlu1 %v485_v26, %s1696_s21  ;;  %s1539_s21 = scalar_lea.vmem %s1538_s8, 512 }
 0x2d3   : > { %p1541_p9 = scmp.lt.s32.totalorder %s1539_s21, %s1533_s11 }
 0x2d5   : > { %p1542_p4 = por %p1541_p9, %p1540_p8 }
 0x2d7   : > { %p1543_p6 = pnand %p1542_p4, %p1536_p2 }
 0x330   : > { %v643_v27 = vpop.permute.xlu1 %642  ;;  %v647_v28 = vpop.permute.xlu0 %646 }
 0x331   : > { %806 = vrot.lane.b32.xlu0 %v643_v27, %s1698_s14  ;;  %650 = vrot.lane.b32.xlu1 %v643_v27, %s1697_s20 }
 0x334   : > { %v645_v29 = vpop.permute.xlu1 %644  ;;  %v494_v40 = vpop.permute.xlu0 %493 }
 0x335   : > { %810 = vrot.lane.b32.xlu0 %v647_v28, %s1698_s14  ;;  %652 = vrot.lane.b32.xlu1 %v645_v29, %s1697_s20 }
 0x338   : > { %v1984_v30 = vpop.permute.xlu1 %648 }
 0x339   : > { %654 = vrot.lane.b32.xlu1 %v647_v28, %s1697_s20 }
 0x33c   : > { %v1986_v34 = vpop.permute.xlu1 %804 }
 0x33d   : > { %808 = vrot.lane.b32.xlu1 %v645_v29, %s1698_s14 }
 0x340   : > { %v488_v39 = vpop.permute.xlu1 %487 }
 0x341   : > { %v512_v43 = vcombine.low %v488_v39, %v494_v40  ;;  %v513_v44 = vcombine.high %v488_v39, %v494_v40 }
 0x343   : > { %v520_v49 = vrot.slane %v512_v43, %v1989_v42  ;;  %v527_v50 = vrot.slane %v513_v44, %v1989_v42 }
 0x344   : > { %v491_v45 = vpop.permute.xlu1 %490 }
 0x345   : > { %v496_v46 = vcombine.low %v485_v26, %v491_v45  ;;  %v497_v47 = vcombine.high %v485_v26, %v491_v45 }
 0x347   : > { %v504_v51 = vrot.slane %v496_v46, %v1989_v42  ;;  %v511_v52 = vrot.slane %v497_v47, %v1989_v42 }
 0x349   : > { %v528_v53 = vcombine.low %v504_v51, %v520_v49  ;;  %v529_v54 = vcombine.high %v504_v51, %v520_v49  ;;  %v544_v55 = vcombine.low %v511_v52, %v527_v50  ;;  %v545_v56 = vcombine.high %v511_v52, %v527_v50 }
 0x34b   : > { %v536_v57 = vrot.slane %v528_v53, %v1991_v48  ;;  %v543_v58 = vrot.slane %v529_v54, %v1991_v48  ;;  %v552_v59 = vrot.slane %v544_v55, %v1991_v48  ;;  %v559_v60 = vrot.slane %v545_v56, %v1991_v48 }
 0x34d   : > { %v564_v61 = vcombine.low %v536_v57, %v543_v58  ;;  %v1231_v62 = vcombine.high %v536_v57, %v543_v58  ;;  %v580_v63 = vcombine.low %v552_v59, %v559_v60  ;;  %v1232_v0 = vcombine.high %v552_v59, %v559_v60 }
 0x34f   : > { %v571_v1 = vrot.slane %v564_v61, %v1989_v42  ;;  %v579_v2 = vrot.slane %v1231_v62, %v1989_v42  ;;  %v587_v3 = vrot.slane %v580_v63, %v1989_v42  ;;  %v595_v4 = vrot.slane %v1232_v0, %v1989_v42 }
 0x351   : > { %v596_v5 = vcombine.low %v571_v1, %v579_v2  ;;  %v597_v6 = vcombine.high %v571_v1, %v579_v2  ;;  %v612_v7 = vcombine.low %v587_v3, %v595_v4  ;;  %v613_v8 = vcombine.high %v587_v3, %v595_v4 }
 0x353   : > { %v604_v9 = vrot.slane %v596_v5, %v1991_v48  ;;  %v611_v10 = vrot.slane %v597_v6, %v1991_v48  ;;  %v620_v11 = vrot.slane %v612_v7, %v1991_v48  ;;  %v627_v12 = vrot.slane %v613_v8, %v1991_v48 }
 0x355   : > { %v628_v13 = vcombine.low %v604_v9, %v620_v11  ;;  %v629_v14 = vcombine.high %v604_v9, %v620_v11  ;;  %v630_v15 = vcombine.low %v611_v10, %v627_v12  ;;  %v631_v16 = vcombine.high %v611_v10, %v627_v12 }
 0x357   : > { %v632_v17 = vpack.c.bf16 %v628_v13, %v628_v13  ;;  %v633_v18 = vpack.c.bf16 %v629_v14, %v629_v14  ;;  %v634_v19 = vpack.c.bf16 %v630_v15, %v630_v15  ;;  %v635_v20 = vpack.c.bf16 %v631_v16, %v631_v16 }
 0x359   : > { %637 = vst.msk [vmem:[%s370_s18] sm:$0xf] %vm636_vm2, %v632_v17  ;;  %638 = vst.msk [vmem:[%s370_s18 + $0x4] sm:$0xf] %vm636_vm2, %v633_v18 }
 0x35a   : > { %639 = vst.msk [vmem:[%s370_s18 + $0x8] sm:$0xf] %vm636_vm2, %v634_v19  ;;  %640 = vst.msk [vmem:[%s370_s18 + $0xc] sm:$0xf] %vm636_vm2, %v635_v20 }
 0x35b   : > { %1546 = shalt.err (!%p1543_p6)
}
 0x35c   : > { %s1547_s20 = scalar_lea.hbm %s2020_s12, 256  ;;  %s1551_s19 = scalar_lea.hbm %s2211_s5, 512 }
 0x35d   : > { %p1548_p3 = scmp.ne.s32.totalorder %s2020_s12, %s1547_s20  ;;  %p1552_p0 = scmp.lt.u32.totalorder %s2020_s12, %s2211_s5 }
 0x35e   : > { %p1553_p5 = scmp.lt.u32.totalorder %s1551_s19, %s1547_s20  ;;  %p1555_p11 = scmp.lt.u32.totalorder %s1547_s20, %s2020_s12 }
 0x35f   : > { %p1549_p1 = pnand %p1548_p3, %p2236_p10 }
 0x360   : > { %p1554_p7 = por %p1553_p5, %p1552_p0 }
 0x361   : > { %p1550_p12 = pneg %p1549_p1 }
 0x362   : > { %p1556_p13 = por %p1555_p11, %p1554_p7 }
 0x364   : > { %p1557_p2 = pnand %p1556_p13, %p1550_p12 }
 0x366   : > { %1560 = shalt.err (!%p1557_p2)
}
 0x367   : > { %s1702_s11 = smov 4   ;;  %s965_s2 = sand.u32 1, %s1776_s30  }
 0x368   : > { %1280 = dma.vmem_to_hbm [thread:$0]  (%p2236_p10), %s2022_s16, 256, %s2020_s12, %s961_s27, %s1698_s14, %s1698_s14, %s1702_s11  }
 0x369   : > { %s377_s16 = scalar_lea.vmem [#allocation12], %s2006_s13  ;;  %s2093_s20 = scalar_lea.hbm %s2212_s6, %s2013_s10 }
 0x36a   : > { %s1002_s12 = sshll.u32 %s377_s16, 4  ;;  %s2106_s18 = scalar_lea.vmem [#allocation14], %s2006_s13  ;;  %s2095_s12 = int_to_ptr.vmem [resolvable:$true] %s1002_s12 }
 0x36b   : > { %s1019_s15 = sshll.u32 %s2106_s18, 4  ;;  %s2111_s19 = scalar_lea.sflag [#allocation13], %s965_s2  ;;  %s2146_s15 = int_to_ptr.vmem [resolvable:$true] %s1019_s15 }
 0x36c   : > { %s1561_s1 = scalar_lea.vmem %s2095_s12, 256  ;;  %s1703_s8 = smov [#allocation12]  }
 0x36d   : > { %p1562_p8 = scmp.ne.s32.totalorder %s2095_s12, %s1561_s1  ;;  %s1565_s27 = sshll.u32 %s1703_s8, 4  ;;  %s1566_s27 = int_to_ptr.vmem [resolvable:$false] %s1565_s27 }
 0x36e   : > { %p1568_p6 = scmp.lt.s32.totalorder %s2095_s12, %s1566_s27 }
 0x36f   : > { %p1563_p9 = pnand %p1562_p8, %p2236_p10 }
 0x371   : > { %p1564_p4 = pneg %p1563_p9 }
 0x3a3   : > { %v651_v21 = vpop.permute.xlu1 %650  ;;  %v807_v22 = vpop.permute.xlu0 %806 }
 0x3a7   : > { %v653_v23 = vpop.permute.xlu1 %652  ;;  %v811_v27 = vpop.permute.xlu0 %810 }
 0x3a8   : > { %v660_v24 = vcombine.low %v1984_v30, %v653_v23  ;;  %v661_v25 = vcombine.high %v1984_v30, %v653_v23  ;;  %v832_v36 = vcombine.low %v807_v22, %v811_v27  ;;  %v833_v37 = vcombine.high %v807_v22, %v811_v27 }
 0x3aa   : > { %v668_v31 = vrot.slane %v660_v24, %v1989_v42  ;;  %v675_v32 = vrot.slane %v661_v25, %v1989_v42  ;;  %v840_v50 = vrot.slane %v832_v36, %v1989_v42  ;;  %v847_v51 = vrot.slane %v833_v37, %v1989_v42 }
 0x3ab   : > { %v655_v26 = vpop.permute.xlu1 %654 }
 0x3ac   : > { %v676_v28 = vcombine.low %v651_v21, %v655_v26  ;;  %v677_v29 = vcombine.high %v651_v21, %v655_v26 }
 0x3ae   : > { %v684_v33 = vrot.slane %v676_v28, %v1989_v42  ;;  %v691_v35 = vrot.slane %v677_v29, %v1989_v42 }
 0x3af   : > { %v809_v38 = vpop.permute.xlu1 %808 }
 0x3b0   : > { %v692_v39 = vcombine.low %v668_v31, %v684_v33  ;;  %v693_v40 = vcombine.high %v668_v31, %v684_v33  ;;  %v708_v41 = vcombine.low %v675_v32, %v691_v35  ;;  %v709_v43 = vcombine.high %v675_v32, %v691_v35 }
 0x3b1   : > { %v816_v30 = vcombine.low %v1986_v34, %v809_v38  ;;  %v817_v44 = vcombine.high %v1986_v34, %v809_v38 }
 0x3b2   : > { %v700_v45 = vrot.slane %v692_v39, %v1991_v48  ;;  %v707_v46 = vrot.slane %v693_v40, %v1991_v48  ;;  %v716_v47 = vrot.slane %v708_v41, %v1991_v48  ;;  %v723_v49 = vrot.slane %v709_v43, %v1991_v48 }
 0x3b3   : > { %v824_v52 = vrot.slane %v816_v30, %v1989_v42  ;;  %v831_v53 = vrot.slane %v817_v44, %v1989_v42 }
 0x3b4   : > { %v728_v54 = vcombine.low %v700_v45, %v707_v46  ;;  %v1233_v55 = vcombine.high %v700_v45, %v707_v46  ;;  %v744_v56 = vcombine.low %v716_v47, %v723_v49  ;;  %v1234_v34 = vcombine.high %v716_v47, %v723_v49 }
 0x3b5   : > { %v848_v57 = vcombine.low %v824_v52, %v840_v50  ;;  %v849_v58 = vcombine.high %v824_v52, %v840_v50  ;;  %v864_v59 = vcombine.low %v831_v53, %v847_v51  ;;  %v865_v60 = vcombine.high %v831_v53, %v847_v51 }
 0x3b6   : > { %v735_v61 = vrot.slane %v728_v54, %v1989_v42  ;;  %v743_v62 = vrot.slane %v1233_v55, %v1989_v42  ;;  %v751_v63 = vrot.slane %v744_v56, %v1989_v42  ;;  %v759_v0 = vrot.slane %v1234_v34, %v1989_v42 }
 0x3b7   : > { %v856_v1 = vrot.slane %v848_v57, %v1991_v48  ;;  %v863_v2 = vrot.slane %v849_v58, %v1991_v48  ;;  %v872_v3 = vrot.slane %v864_v59, %v1991_v48  ;;  %v879_v4 = vrot.slane %v865_v60, %v1991_v48 }
 0x3b8   : > { %v760_v5 = vcombine.low %v735_v61, %v743_v62  ;;  %v761_v6 = vcombine.high %v735_v61, %v743_v62  ;;  %v776_v7 = vcombine.low %v751_v63, %v759_v0  ;;  %v777_v8 = vcombine.high %v751_v63, %v759_v0 }
 0x3b9   : > { %v884_v9 = vcombine.low %v856_v1, %v863_v2  ;;  %v1235_v10 = vcombine.high %v856_v1, %v863_v2  ;;  %v900_v11 = vcombine.low %v872_v3, %v879_v4  ;;  %v1236_v12 = vcombine.high %v872_v3, %v879_v4 }
 0x3ba   : > { %v768_v13 = vrot.slane %v760_v5, %v1991_v48  ;;  %v775_v14 = vrot.slane %v761_v6, %v1991_v48  ;;  %v784_v15 = vrot.slane %v776_v7, %v1991_v48  ;;  %v791_v16 = vrot.slane %v777_v8, %v1991_v48 }
 0x3bb   : > { %v891_v17 = vrot.slane %v884_v9, %v1989_v42  ;;  %v899_v18 = vrot.slane %v1235_v10, %v1989_v42  ;;  %v907_v19 = vrot.slane %v900_v11, %v1989_v42  ;;  %v915_v20 = vrot.slane %v1236_v12, %v1989_v42 }
 0x3bc   : > { %v792_v21 = vcombine.low %v768_v13, %v784_v15  ;;  %v793_v22 = vcombine.high %v768_v13, %v784_v15  ;;  %v794_v23 = vcombine.low %v775_v14, %v791_v16  ;;  %v795_v24 = vcombine.high %v775_v14, %v791_v16 }
 0x3bd   : > { %v916_v25 = vcombine.low %v891_v17, %v899_v18  ;;  %v917_v26 = vcombine.high %v891_v17, %v899_v18  ;;  %v932_v27 = vcombine.low %v907_v19, %v915_v20  ;;  %v933_v28 = vcombine.high %v907_v19, %v915_v20 }
 0x3be   : > { %v796_v29 = vpack.c.bf16 %v792_v21, %v792_v21  ;;  %v797_v31 = vpack.c.bf16 %v793_v22, %v793_v22  ;;  %v798_v32 = vpack.c.bf16 %v794_v23, %v794_v23  ;;  %v799_v33 = vpack.c.bf16 %v795_v24, %v795_v24 }
 0x3bf   : > { %v924_v42 = vrot.slane %v916_v25, %v1991_v48  ;;  %v931_v35 = vrot.slane %v917_v26, %v1991_v48  ;;  %v940_v36 = vrot.slane %v932_v27, %v1991_v48  ;;  %v947_v37 = vrot.slane %v933_v28, %v1991_v48 }
 0x3c0   : > { %800 = vst.msk [vmem:[%s377_s16] sm:$0xf] %vm636_vm2, %v796_v29  ;;  %801 = vst.msk [vmem:[%s377_s16 + $0x4] sm:$0xf] %vm636_vm2, %v797_v31 }
 0x3c1   : > { %802 = vst.msk [vmem:[%s377_s16 + $0x8] sm:$0xf] %vm636_vm2, %v798_v32  ;;  %803 = vst.msk [vmem:[%s377_s16 + $0xc] sm:$0xf] %vm636_vm2, %v799_v33  ;;  %v948_v38 = vcombine.low %v924_v42, %v940_v36  ;;  %v949_v39 = vcombine.high %v924_v42, %v940_v36  ;;  %v950_v40 = vcombine.low %v931_v35, %v947_v37  ;;  %s1567_s16 = scalar_lea.vmem %s1566_s27, 512 }
 0x3c2   : > { %v951_v41 = vcombine.high %v931_v35, %v947_v37  ;;  %p1569_p3 = scmp.lt.s32.totalorder %s1567_s16, %s1561_s1 }
 0x3c4   : > { %p1570_p1 = por %p1569_p3, %p1568_p6 }
 0x3c6   : > { %p1571_p12 = pnand %p1570_p1, %p1564_p4 }
 0x3c8   : > { %1574 = shalt.err (!%p1571_p12)
}
 0x3c9   : > { %s1575_s30 = scalar_lea.hbm %s2093_s20, 256  ;;  %s1579_s21 = scalar_lea.hbm %s2212_s6, 512 }
 0x3ca   : > { %p1576_p0 = scmp.ne.s32.totalorder %s2093_s20, %s1575_s30  ;;  %p1580_p11 = scmp.lt.u32.totalorder %s2093_s20, %s2212_s6 }
 0x3cb   : > { %p1581_p13 = scmp.lt.u32.totalorder %s1579_s21, %s1575_s30  ;;  %p1583_p8 = scmp.lt.u32.totalorder %s1575_s30, %s2093_s20 }
 0x3cc   : > { %p1577_p5 = pnand %p1576_p0, %p2236_p10 }
 0x3cd   : > { %p1582_p2 = por %p1581_p13, %p1580_p11 }
 0x3ce   : > { %p1578_p7 = pneg %p1577_p5 }
 0x3cf   : > { %p1584_p9 = por %p1583_p8, %p1582_p2 }
 0x3d1   : > { %p1585_p4 = pnand %p1584_p9, %p1578_p7 }
 0x3d3   : > { %1588 = shalt.err (!%p1585_p4)
}
 0x3d4   : > { %1281 = dma.vmem_to_hbm [thread:$0]  (%p2236_p10), %s2095_s12, 256, %s2093_s20, %s2111_s19, %s1698_s14, %s1698_s14, %s1702_s11   ;;  %v952_v48 = vpack.c.bf16 %v948_v38, %v948_v38  ;;  %v953_v43 = vpack.c.bf16 %v949_v39, %v949_v39  ;;  %v954_v30 = vpack.c.bf16 %v950_v40, %v950_v40  ;;  %v955_v44 = vpack.c.bf16 %v951_v41, %v951_v41 }
 0x3d5   : > { %s2142_s30 = scalar_lea.hbm %s2213_s7, %s2013_s10  ;;  %s1589_s12 = scalar_lea.vmem %s2146_s15, 256 }
 0x3d6   : > { %956 = vst.msk [vmem:[%s2106_s18] sm:$0xf] %vm636_vm2, %v952_v48  ;;  %957 = vst.msk [vmem:[%s2106_s18 + $0x4] sm:$0xf] %vm636_vm2, %v953_v43  ;;  %p1590_p6 = scmp.ne.s32.totalorder %s2146_s15, %s1589_s12  ;;  %s1704_s10 = smov [#allocation14]  }
 0x3d7   : > { %958 = vst.msk [vmem:[%s2106_s18 + $0x8] sm:$0xf] %vm636_vm2, %v954_v30  ;;  %959 = vst.msk [vmem:[%s2106_s18 + $0xc] sm:$0xf] %vm636_vm2, %v955_v44  ;;  %s1593_s20 = sshll.u32 %s1704_s10, 4  ;;  %s1594_s20 = int_to_ptr.vmem [resolvable:$false] %s1593_s20 }
 0x3d8   : > { %p1591_p3 = pnand %p1590_p6, %p2236_p10  ;;  %s1595_s13 = scalar_lea.vmem %s1594_s20, 512 }
 0x3d9   : > { %p1596_p12 = scmp.lt.s32.totalorder %s2146_s15, %s1594_s20  ;;  %p1597_p0 = scmp.lt.s32.totalorder %s1595_s13, %s1589_s12 }
 0x3da   : > { %p1592_p1 = pneg %p1591_p3 }
 0x3db   : > { %p1598_p5 = por %p1597_p0, %p1596_p12 }
 0x3dd   : > { %p1599_p7 = pnand %p1598_p5, %p1592_p1 }
 0x3df   : > { %1602 = shalt.err (!%p1599_p7)
}
 0x3e0   : > { %s1603_s18 = scalar_lea.hbm %s2142_s30, 256  ;;  %s1607_s8 = scalar_lea.hbm %s2213_s7, 512 }
 0x3e1   : > { %p1604_p11 = scmp.ne.s32.totalorder %s2142_s30, %s1603_s18  ;;  %p1608_p8 = scmp.lt.u32.totalorder %s2142_s30, %s2213_s7 }
 0x3e2   : > { %p1609_p9 = scmp.lt.u32.totalorder %s1607_s8, %s1603_s18  ;;  %p1611_p6 = scmp.lt.u32.totalorder %s1603_s18, %s2142_s30 }
 0x3e3   : > { %p1605_p13 = pnand %p1604_p11, %p2236_p10 }
 0x3e4   : > { %p1610_p4 = por %p1609_p9, %p1608_p8 }
 0x3e5   : > { %p1606_p2 = pneg %p1605_p13 }
 0x3e6   : > { %p1612_p3 = por %p1611_p6, %p1610_p4 }
 0x3e8   : > { %p1613_p1 = pnand %p1612_p3, %p1606_p2 }
 0x3ea   : > { %1616 = shalt.err (!%p1613_p1)
}
 0x3eb   : > { %1282 = dma.vmem_to_hbm [thread:$0]  (%p2236_p10), %s2146_s15, 256, %s2142_s30, %s2111_s19, %s1698_s14, %s1698_s14, %s1702_s11  }
 0x3ec PF: > { %s1034_s16 = sand.u32 1, %s1663_s24   ;;  %p2237_p12 = scmp.ne.s32.totalorder %s2229_s9, 0 }
 0x3ed   : > { %p2238_p0 = scmp.ge.s32.totalorder %s1683_s29, 2  ;;  %s1035_s12 = scalar_lea.sflag [#allocation4], %s1034_s16 }
 0x3ef   : > { %p1304_p5 = pnand %p2238_p0, %p2237_p12 }
 0x3f1   : > { %1654 = dma.done.wait (!%p1304_p5), %s1035_s12, 256  }
 0x3f2   : > { %1656 = vsyncadd (!%p1304_p5), %s1035_s12, 4294967040  ;;  %s2239_s22 = sadd.s32 4294967294, %s1683_s29  }
 0x3f3   : > { %s1043_s10 = sand.u32 1, %s2239_s22  }
 0x3f4   : > { %s1044_s20 = scalar_lea.sflag [#allocation13], %s1043_s10 }
 0x3f5   : > { %1658 = dma.done.wait (!%p1304_p5), %s1044_s20, 512  }
 0x3f6   : > { %1660 = vsyncadd (!%p1304_p5), %s1044_s20, 4294966784  ;;  %s29_s29 = sadd.s32 1, %s1683_s29   ;;  %s2240_s24 = smov %s1667_s25 }
 0x3f7   : > { %p26_p10 = scmp.ge.s32.totalorder %s29_s29, 4   ;;  %s2241_s25 = smov %s1671_s26 }
 0x3f8   : > { %s2242_s26 = smov %s1912_s23  ;;  %s2243_s27 = smov %s1679_s28 }
 0x3f9   : > { %s2244_s28 = smov %s2246_s17  ;;  %28 = sbr.rel (!%p26_p10) target bundleno = 13 (0xd), region = 133 }
 0x400   :  { %1058 = vsyncpa [#allocation3], 1 }
 0x401   :  { %1060 = vsyncpa [#allocation3 + $0x1], 1 }
 0x402   :  { %1061 = vsyncpa [#allocation6], 1 }
 0x403   :  { %1062 = vsyncpa [#allocation9], 1 }
 0x404   :  { %1063 = vsyncpa [#allocation4], 1 }
 0x405   :  { %1065 = vsyncpa [#allocation4 + $0x1], 1 }
 0x406   :  { %1066 = vsyncpa [#allocation13], 1 }
 0x407   :  { %1068 = vsyncpa [#allocation13 + $0x1], 1 }

</bundles_post_ra>
